<compile_context>
chip_gen: v6e
topology: v6e:2x2x1
jax: 0.10.0
libtpu: 0.0.40
codegen_flags: <defaults>
</compile_context>

<pallas_src>
import functools

import numpy as np
import jax
import jax.numpy as jnp
from jax import lax
from jax.experimental import pallas as pl
from jax.experimental.pallas import tpu as pltpu


def _mha_fast_kernel(x_ref, wq_ref, wk_ref, wv_ref, o_ref, acc_ref, q_ref,
                     *, key_tile, group, head_size, approx_recip, split_q):
    # x_ref : (T, C)        one batch element (batch dim squeezed)
    # wq_ref: (C, G*HS)     this head-group's Q projection columns
    # wk_ref: (G*HS, C)     this head-group's K projection, pre-transposed
    # wv_ref: (G*HS, C)     this head-group's V projection, pre-transposed
    # o_ref : (T, G*HS)     this head-group's slice of the (B, T, C) output
    # acc_ref: (T, G*HS) f32 accumulator across key tiles
    # q_ref : (G, T, HS)    per-head cached (already scaled) Q, compute dtype
    kt = pl.program_id(2)
    cdt = x_ref.dtype
    T = x_ref.shape[0]
    G, HS = group, head_size
    scale = jnp.float32(T ** -0.5)                 # full-sequence scale
    mm = (((1,), (0,)), ((), ()))                  # standard matmul
    mm_t = (((1,), (1,)), ((), ()))                # contract both last dims (rhs^T)

    # ---- per-(batch, head-group) init: project + pre-scale Q once ----
    @pl.when(kt == 0)
    def _():
        q_all = lax.dot_general(x_ref[...], wq_ref[...], mm,
                                preferred_element_type=jnp.float32) * scale
        for g in range(G):                          # split per head once, not per tile
            q_ref[g] = q_all[:, g * HS:(g + 1) * HS].astype(cdt)
        acc_ref[...] = jnp.zeros_like(acc_ref)

    # ---- K / V projections for this key tile, transposed (G*HS, Tk) layout ----
    k_start = pl.multiple_of(kt * key_tile, key_tile)
    x_kt = x_ref[pl.ds(k_start, key_tile), :]                            # (Tk, C)
    k_t = lax.dot_general(wk_ref[...], x_kt, mm_t,
                          preferred_element_type=jnp.float32).astype(cdt)  # (G*HS, Tk)
    v_t = lax.dot_general(wv_ref[...], x_kt, mm_t,
                          preferred_element_type=jnp.float32).astype(cdt)  # (G*HS, Tk)

    # global key indices for this tile (shared by all heads / both branches)
    k_idx = lax.broadcasted_iota(jnp.int32, (1, key_tile), 1) + k_start

    def attend(q_start):
        # queries [q_start, T) against keys [k_start, k_start + key_tile)
        q_len = T - q_start
        q_idx = lax.broadcasted_iota(jnp.int32, (q_len, 1), 0) + q_start
        mask = q_idx >= k_idx                                           # (q_len, Tk)
        outs = []
        for g in range(G):
            qg = q_ref[g, q_start:, :]                                  # (q_len, HS)
            kg = k_t[g * HS:(g + 1) * HS, :]                            # (HS, Tk)
            vg = v_t[g * HS:(g + 1) * HS, :]                            # (HS, Tk)
            # scores (scale already folded into q)
            s = lax.dot_general(qg, kg, mm,
                                preferred_element_type=jnp.float32)     # (q_len, Tk)
            s = jnp.where(mask, s, -jnp.inf)
            # softmax over the QUERY axis (torch dim=2); each key column keeps
            # at least its diagonal query, so max is finite and the sum > 0.
            m = jnp.max(s, axis=0, keepdims=True)                       # (1, Tk)
            e = jnp.exp(s - m)                                          # f32, EUP
            inv = pl.reciprocal(jnp.sum(e, axis=0, keepdims=True),
                                approx=approx_recip)                    # (1, Tk)
            # fold the denominator into V (HS*Tk elems) instead of P (T*Tk)
            v_sc = vg * inv.astype(cdt)                                 # (HS, Tk)
            outs.append(lax.dot_general(e.astype(cdt), v_sc, mm_t,
                                        preferred_element_type=jnp.float32))
        upd = outs[0] if G == 1 else jnp.concatenate(outs, axis=-1)     # (q_len, G*HS)
        acc_ref[q_start:, :] += upd

    if split_q:
        half = T // 2
        # Key tiles entirely in the bottom-right quadrant only touch queries
        # q >= T/2 (both for the mask and for the column softmax sums).
        @pl.when(k_start < half)
        def _():
            attend(0)

        @pl.when(k_start >= half)
        def _():
            attend(half)
    else:
        attend(0)

    # ---- finalize: single lane-dense store of this group's (T, G*HS) slab ----
    @pl.when(kt == pl.num_programs(2) - 1)
    def _():
        o_ref[...] = acc_ref[...].astype(o_ref.dtype)


def _default_key_tile(T):
    if T <= 1024:
        return T
    for cand in (512, 256, 128):
        if T % cand == 0:
            return cand
    return T


def _choose_group(H, HS):
    """Smallest G dividing H with G*HS a multiple of 128; else all heads."""
    for G in range(1, H + 1):
        if H % G == 0 and (G * HS) % 128 == 0:
            return G
    return H          # G*HS == C == full output width -> still a legal full block


def _vmem_limit_bytes():
    phys = 64 * 1024 * 1024                      # conservative fallback (v7x-sized)
    try:
        info = pltpu.get_tpu_info()
        cap = getattr(info, "vmem_capacity_bytes", None)
        if cap:
            phys = int(cap)
    except Exception:
        pass
    # ~80% of physical, capped: ~51 MiB on v7x (64 MiB), ~102 MiB on v5e/v6e.
    return min((phys * 4) // 5, 112 * 1024 * 1024)


def multi_head_fast(x, w_qkv, *, head_cnt, head_size, key_tile=None,
                    compute_dtype=None, group_size=None):
    """x: (B, T, C); w_qkv: (C, 3*head_cnt*head_size) == Ws.weight.T.

    compute_dtype=jnp.bfloat16 enables the bf16 MXU fast path (accumulation and
    softmax stay f32); default keeps the input dtype (exact f32 semantics).
    """
    B, T, C = x.shape
    H, HS = head_cnt, head_size
    assert H * HS == C, "forward's .view(B, T, C) requires head_cnt*head_size == C"
    assert w_qkv.shape == (C, 3 * H * HS)

    cdt = np.dtype(compute_dtype) if compute_dtype is not None else np.dtype(x.dtype)
    is_bf16 = cdt == np.dtype(jnp.bfloat16)
    approx_recip = bool(is_bf16)

    if key_tile is None:
        key_tile = _default_key_tile(T)
    assert T % key_tile == 0, "T must be divisible by key_tile"
    row_align = 16 if is_bf16 else 8             # sublane packing (bf16 packs 16 rows)
    assert key_tile == T or key_tile % row_align == 0, \
        f"key_tile must be a multiple of {row_align} (or == T)"
    nkt = T // key_tile

    G = group_size if group_size is not None else _choose_group(H, HS)
    assert H % G == 0
    n_groups = H // G

    # Static causal split only when the half boundary is sublane-aligned.
    split_q = (nkt >= 2) and (T % (2 * row_align) == 0)

    # Head-group-major weights (done once at load time in a real model):
    #   wq: (H/G, C, G*HS);  wk, wv pre-transposed: (H/G, G*HS, C)
    w3 = w_qkv.reshape(C, 3, H, HS)
    wq = jnp.transpose(w3[:, 0].reshape(C, n_groups, G * HS), (1, 0, 2)).astype(cdt)
    wk = jnp.transpose(w3[:, 1].reshape(C, n_groups, G * HS), (1, 2, 0)).astype(cdt)
    wv = jnp.transpose(w3[:, 2].reshape(C, n_groups, G * HS), (1, 2, 0)).astype(cdt)
    x_c = x.astype(cdt)

    kernel = functools.partial(_mha_fast_kernel, key_tile=key_tile, group=G,
                               head_size=HS, approx_recip=approx_recip,
                               split_q=split_q)

    # x only changes on the outermost (batch) axis -> its second pipeline
    # buffer buys nothing; drop it for large x (v7x VMEM re-budget).
    x_spec_kwargs = {}
    if T * C * cdt.itemsize > (4 << 20):
        x_spec_kwargs["pipeline_mode"] = pl.Buffered(1)
    # TODO(synk): for very long T (T*C bytes >> VMEM) stream x from HBM
    # (memory_space=pl.ANY + chunked DMA) instead of keeping it resident.

    out = pl.pallas_call(
        kernel,
        out_shape=jax.ShapeDtypeStruct((B, T, C), x.dtype),
        grid_spec=pltpu.PrefetchScalarGridSpec(
            num_scalar_prefetch=0,
            grid=(B, n_groups, nkt),
            in_specs=[
                pl.BlockSpec((None, T, C), lambda b, g, k: (b, 0, 0),
                             **x_spec_kwargs),
                pl.BlockSpec((None, C, G * HS), lambda b, g, k: (g, 0, 0)),
                pl.BlockSpec((None, G * HS, C), lambda b, g, k: (g, 0, 0)),
                pl.BlockSpec((None, G * HS, C), lambda b, g, k: (g, 0, 0)),
            ],
            # Direct (B, T, C) output: lane-dense column block per head group.
            out_specs=pl.BlockSpec((None, T, G * HS), lambda b, g, k: (b, 0, g)),
            scratch_shapes=[
                pltpu.VMEM((T, G * HS), jnp.float32),   # f32 output accumulator
                pltpu.VMEM((G, T, HS), cdt),            # cached, pre-scaled Q
            ],
        ),
        compiler_params=pltpu.CompilerParams(
            dimension_semantics=("parallel", "parallel", "arbitrary"),
            vmem_limit_bytes=_vmem_limit_bytes(),
        ),
    )(x_c, wq, wk, wv)
    return out


def multi_head_fast_ref(x, w_qkv, *, head_cnt, head_size):
    """Pure-JAX reference mirroring the PyTorch forward exactly."""
    B, T, C = x.shape
    H, HS = head_cnt, head_size
    qkv = x @ w_qkv                                   # (B, T, 3*H*HS)
    q, k, v = jnp.split(qkv, 3, axis=-1)
    q = q.reshape(B, T, H, HS).transpose(0, 2, 1, 3)  # (B, H, T, HS)
    k = k.reshape(B, T, H, HS).transpose(0, 2, 1, 3)
    v = v.reshape(B, T, H, HS).transpose(0, 2, 1, 3)
    w = jnp.einsum("bhqd,bhkd->bhqk", q, k)
    tril = jnp.tril(jnp.ones((T, T)))
    w = jnp.where(tril == 0, -jnp.inf, w) * (T ** -0.5)
    w = jax.nn.softmax(w, axis=2)                     # softmax over QUERY axis
    out = jnp.einsum("bhqk,bhkd->bhqd", w, v)
    return out.transpose(0, 2, 1, 3).reshape(B, T, C)


if __name__ == "__main__":
    # Small shapes consistent with the module: emb_size = head_cnt * head_size.
    # T=16 with key_tile=8 -> two key tiles, exercising the reduction axis and
    # the static causal split (f32 path).
    B, T = 2, 16
    head_cnt, head_size = 4, 8
    emb_size = head_cnt * head_size                  # 32
    max_len = 16
    assert T <= max_len

    key = jax.random.PRNGKey(0)
    kx, kw, kwo = jax.random.split(key, 3)

    x = jax.random.normal(kx, (B, T, emb_size), dtype=jnp.float32)
    # Ws.weight in PyTorch is (3*H*HS, emb_size); the kernel takes its transpose.
    ws_weight = jax.random.normal(
        kw, (3 * head_cnt * head_size, emb_size), dtype=jnp.float32) * 0.1
    w_qkv = ws_weight.T                               # (emb_size, 3*H*HS)
    # WO is defined in __init__ but never applied in forward(); not used here either.

    ref = multi_head_fast_ref(x, w_qkv, head_cnt=head_cnt, head_size=head_size)

    # Exact f32 path (two key tiles + causal split).
    out = multi_head_fast(x, w_qkv, head_cnt=head_cnt, head_size=head_size,
                          key_tile=8)
    out = jax.block_until_ready(out)
    assert out.shape == (B, T, emb_size)
    assert jnp.allclose(out, ref, atol=1e-4, rtol=1e-4), "f32 kernel mismatch vs reference"

    # bf16 MXU fast path (f32 accumulation / softmax) — looser tolerance.
    out_bf16 = multi_head_fast(x, w_qkv, head_cnt=head_cnt, head_size=head_size,
                               compute_dtype=jnp.bfloat16)
    out_bf16 = jax.block_until_ready(out_bf16)
    assert jnp.allclose(out_bf16, ref, atol=5e-2, rtol=5e-2), "bf16 kernel mismatch vs reference"

    print("KERNEL_OK")
</pallas_src>

<mosaic_0001>
module attributes {stable_mosaic.version = 11 : i64} {
  func.func @_mha_fast_kernel(%arg0: i32, %arg1: i32, %arg2: i32, %arg3: memref<1x16x32xf32, #tpu.memory_space<vmem>>, %arg4: memref<1x32x32xf32, #tpu.memory_space<vmem>>, %arg5: memref<1x32x32xf32, #tpu.memory_space<vmem>>, %arg6: memref<1x32x32xf32, #tpu.memory_space<vmem>>, %arg7: memref<1x16x32xf32, #tpu.memory_space<vmem>>, %arg8: memref<16x32xf32, #tpu.memory_space<vmem>>, %arg9: memref<4x16x8xf32, #tpu.memory_space<vmem>>) attributes {dimension_semantics = [#tpu.dimension_semantics<parallel>, #tpu.dimension_semantics<parallel>, #tpu.dimension_semantics<arbitrary>], iteration_bounds = array<i64: 2, 1, 2>, scalar_prefetch = 0 : i64, scratch_operands = 2 : i64, tpu.core_type = #tpu.core_type<tc>, window_params = [{transform_indices = @transform_0, window_bounds = array<i64: 1, 16, 32>}, {transform_indices = @transform_1, window_bounds = array<i64: 1, 32, 32>}, {transform_indices = @transform_2, window_bounds = array<i64: 1, 32, 32>}, {transform_indices = @transform_3, window_bounds = array<i64: 1, 32, 32>}, {transform_indices = @transform_4, window_bounds = array<i64: 1, 16, 32>}]} {
    %c0_i32 = arith.constant 0 : i32
    %0 = arith.cmpi eq, %arg2, %c0_i32 : i32
    %1 = arith.extui %0 : i1 to i32
    %cst = arith.constant 2.500000e-01 : f32
    %c0_i32_0 = arith.constant 0 : i32
    %2 = arith.cmpi ne, %1, %c0_i32_0 : i32
    scf.if %2 {
      %c0_15 = arith.constant 0 : index
      %c0_16 = arith.constant 0 : index
      %c0_17 = arith.constant 0 : index
      %26 = vector.load %arg3[%c0_15, %c0_16, %c0_17] : memref<1x16x32xf32, #tpu.memory_space<vmem>>, vector<1x16x32xf32>
      %27 = vector.shape_cast %26 : vector<1x16x32xf32> to vector<16x32xf32>
      %c0_18 = arith.constant 0 : index
      %c0_19 = arith.constant 0 : index
      %c0_20 = arith.constant 0 : index
      %28 = vector.load %arg4[%c0_18, %c0_19, %c0_20] : memref<1x32x32xf32, #tpu.memory_space<vmem>>, vector<1x32x32xf32>
      %29 = vector.shape_cast %28 : vector<1x32x32xf32> to vector<32x32xf32>
      %cst_21 = arith.constant dense<0.000000e+00> : vector<16x32xf32>
      %30 = tpu.matmul %27, %29, %cst_21 {dimension_numbers = #tpu.dot_dimension_numbers<[1], [0], [0], [1], [0, 0, 1, 1], [], []>} : vector<16x32xf32>, vector<32x32xf32>, vector<16x32xf32> -> vector<16x32xf32>
      %31 = vector.broadcast %cst : f32 to vector<16x32xf32>
      %32 = arith.mulf %30, %31 : vector<16x32xf32>
      %33 = vector.extract_strided_slice %32 {offsets = [0, 0], sizes = [16, 8], strides = [1, 1]} : vector<16x32xf32> to vector<16x8xf32>
      %c0_22 = arith.constant 0 : index
      %c0_23 = arith.constant 0 : index
      %c0_24 = arith.constant 0 : index
      %34 = vector.load %arg9[%c0_22, %c0_23, %c0_24] : memref<4x16x8xf32, #tpu.memory_space<vmem>>, vector<1x16x8xf32>
      %35 = vector.shape_cast %34 : vector<1x16x8xf32> to vector<16x8xf32>
      %36 = vector.shape_cast %33 : vector<16x8xf32> to vector<1x16x8xf32>
      tpu.vector_store %arg9[%c0_22, %c0_23, %c0_24], %36 {strides = array<i32>} : memref<4x16x8xf32, #tpu.memory_space<vmem>>, vector<1x16x8xf32>,
      %37 = vector.extract_strided_slice %32 {offsets = [0, 8], sizes = [16, 8], strides = [1, 1]} : vector<16x32xf32> to vector<16x8xf32>
      %c1 = arith.constant 1 : index
      %c0_25 = arith.constant 0 : index
      %c0_26 = arith.constant 0 : index
      %38 = vector.load %arg9[%c1, %c0_25, %c0_26] : memref<4x16x8xf32, #tpu.memory_space<vmem>>, vector<1x16x8xf32>
      %39 = vector.shape_cast %38 : vector<1x16x8xf32> to vector<16x8xf32>
      %40 = vector.shape_cast %37 : vector<16x8xf32> to vector<1x16x8xf32>
      tpu.vector_store %arg9[%c1, %c0_25, %c0_26], %40 {strides = array<i32>} : memref<4x16x8xf32, #tpu.memory_space<vmem>>, vector<1x16x8xf32>,
      %41 = vector.extract_strided_slice %32 {offsets = [0, 16], sizes = [16, 8], strides = [1, 1]} : vector<16x32xf32> to vector<16x8xf32>
      %c2 = arith.constant 2 : index
      %c0_27 = arith.constant 0 : index
      %c0_28 = arith.constant 0 : index
      %42 = vector.load %arg9[%c2, %c0_27, %c0_28] : memref<4x16x8xf32, #tpu.memory_space<vmem>>, vector<1x16x8xf32>
      %43 = vector.shape_cast %42 : vector<1x16x8xf32> to vector<16x8xf32>
      %44 = vector.shape_cast %41 : vector<16x8xf32> to vector<1x16x8xf32>
      tpu.vector_store %arg9[%c2, %c0_27, %c0_28], %44 {strides = array<i32>} : memref<4x16x8xf32, #tpu.memory_space<vmem>>, vector<1x16x8xf32>,
      %45 = vector.extract_strided_slice %32 {offsets = [0, 24], sizes = [16, 8], strides = [1, 1]} : vector<16x32xf32> to vector<16x8xf32>
      %c3 = arith.constant 3 : index
      %c0_29 = arith.constant 0 : index
      %c0_30 = arith.constant 0 : index
      %46 = vector.load %arg9[%c3, %c0_29, %c0_30] : memref<4x16x8xf32, #tpu.memory_space<vmem>>, vector<1x16x8xf32>
      %47 = vector.shape_cast %46 : vector<1x16x8xf32> to vector<16x8xf32>
      %48 = vector.shape_cast %45 : vector<16x8xf32> to vector<1x16x8xf32>
      tpu.vector_store %arg9[%c3, %c0_29, %c0_30], %48 {strides = array<i32>} : memref<4x16x8xf32, #tpu.memory_space<vmem>>, vector<1x16x8xf32>,
      %cst_31 = arith.constant 0.000000e+00 : f32
      %49 = vector.broadcast %cst_31 : f32 to vector<16x32xf32>
      %c0_32 = arith.constant 0 : index
      %c0_33 = arith.constant 0 : index
      %50 = vector.load %arg8[%c0_32, %c0_33] : memref<16x32xf32, #tpu.memory_space<vmem>>, vector<16x32xf32>
      tpu.vector_store %arg8[%c0_32, %c0_33], %49 {strides = array<i32>} : memref<16x32xf32, #tpu.memory_space<vmem>>, vector<16x32xf32>,
    } else {
    }
    %c8_i32 = arith.constant 8 : i32
    %3 = arith.muli %arg2, %c8_i32 : i32
    %4 = tpu.assume_multiple %3, 8 : i32
    %c0 = arith.constant 0 : index
    %5 = arith.index_cast %4 : i32 to index
    %c0_1 = arith.constant 0 : index
    %6 = vector.load %arg3[%c0, %5, %c0_1] : memref<1x16x32xf32, #tpu.memory_space<vmem>>, vector<1x8x32xf32>
    %7 = vector.shape_cast %6 : vector<1x8x32xf32> to vector<8x32xf32>
    %c0_2 = arith.constant 0 : index
    %c0_3 = arith.constant 0 : index
    %c0_4 = arith.constant 0 : index
    %8 = vector.load %arg5[%c0_2, %c0_3, %c0_4] : memref<1x32x32xf32, #tpu.memory_space<vmem>>, vector<1x32x32xf32>
    %9 = vector.shape_cast %8 : vector<1x32x32xf32> to vector<32x32xf32>
    %cst_5 = arith.constant dense<0.000000e+00> : vector<32x8xf32>
    %10 = tpu.matmul %9, %7, %cst_5 {dimension_numbers = #tpu.dot_dimension_numbers<[1], [1], [0], [0], [0, 0, 1, 0], [], []>} : vector<32x32xf32>, vector<8x32xf32>, vector<32x8xf32> -> vector<32x8xf32>
    %c0_6 = arith.constant 0 : index
    %c0_7 = arith.constant 0 : index
    %c0_8 = arith.constant 0 : index
    %11 = vector.load %arg6[%c0_6, %c0_7, %c0_8] : memref<1x32x32xf32, #tpu.memory_space<vmem>>, vector<1x32x32xf32>
    %12 = vector.shape_cast %11 : vector<1x32x32xf32> to vector<32x32xf32>
    %cst_9 = arith.constant dense<0.000000e+00> : vector<32x8xf32>
    %13 = tpu.matmul %12, %7, %cst_9 {dimension_numbers = #tpu.dot_dimension_numbers<[1], [1], [0], [0], [0, 0, 1, 0], [], []>} : vector<32x32xf32>, vector<8x32xf32>, vector<32x8xf32> -> vector<32x8xf32>
    %14 = tpu.iota {dimensions = array<i32: 1>} : vector<1x8xi32>
    %15 = vector.broadcast %4 : i32 to vector<1x8xi32>
    %16 = arith.addi %14, %15 : vector<1x8xi32>
    %c8_i32_10 = arith.constant 8 : i32
    %17 = arith.cmpi slt, %4, %c8_i32_10 : i32
    %18 = arith.extui %17 : i1 to i32
    %c0_i32_11 = arith.constant 0 : i32
    %19 = arith.cmpi ne, %18, %c0_i32_11 : i32
    scf.if %19 {
      %26 = tpu.iota {dimensions = array<i32: 0>} : vector<16x1xi32>
      %c0_i32_15 = arith.constant 0 : i32
      %27 = vector.broadcast %c0_i32_15 : i32 to vector<16x1xi32>
      %28 = arith.addi %26, %27 : vector<16x1xi32>
      %29 = vector.broadcast %28 : vector<16x1xi32> to vector<16x8xi32>
      %30 = vector.broadcast %16 : vector<1x8xi32> to vector<16x8xi32>
      %31 = arith.cmpi sge, %29, %30 : vector<16x8xi32>
      %c0_16 = arith.constant 0 : index
      %c0_17 = arith.constant 0 : index
      %c0_18 = arith.constant 0 : index
      %32 = vector.load %arg9[%c0_16, %c0_17, %c0_18] : memref<4x16x8xf32, #tpu.memory_space<vmem>>, vector<1x16x8xf32>
      %33 = vector.shape_cast %32 : vector<1x16x8xf32> to vector<16x8xf32>
      %34 = vector.extract_strided_slice %10 {offsets = [0, 0], sizes = [8, 8], strides = [1, 1]} : vector<32x8xf32> to vector<8x8xf32>
      %35 = vector.extract_strided_slice %13 {offsets = [0, 0], sizes = [8, 8], strides = [1, 1]} : vector<32x8xf32> to vector<8x8xf32>
      %cst_19 = arith.constant dense<0.000000e+00> : vector<16x8xf32>
      %36 = tpu.matmul %33, %34, %cst_19 {dimension_numbers = #tpu.dot_dimension_numbers<[1], [0], [0], [1], [0, 0, 1, 1], [], []>} : vector<16x8xf32>, vector<8x8xf32>, vector<16x8xf32> -> vector<16x8xf32>
      %cst_20 = arith.constant 0xFF800000 : f32
      %37 = vector.broadcast %cst_20 : f32 to vector<16x8xf32>
      %38 = arith.select %31, %36, %37 : vector<16x8xi1>, vector<16x8xf32>
      %cst_21 = arith.constant dense<0xFF800000> : vector<8xf32>
      %39 = vector.multi_reduction <maximumf>, %38, %cst_21 [0] : vector<16x8xf32> to vector<8xf32>
      %40 = vector.shape_cast %39 : vector<8xf32> to vector<1x8xf32>
      %41 = vector.broadcast %40 : vector<1x8xf32> to vector<16x8xf32>
      %42 = arith.subf %38, %41 : vector<16x8xf32>
      %43 = math.exp %42 : vector<16x8xf32>
      %cst_22 = arith.constant dense<0.000000e+00> : vector<8xf32>
      %44 = vector.multi_reduction <add>, %43, %cst_22 [0] : vector<16x8xf32> to vector<8xf32>
      %45 = vector.shape_cast %44 : vector<8xf32> to vector<1x8xf32>
      %46 = tpu.reciprocal %45 : vector<1x8xf32> -> vector<1x8xf32>
      %47 = vector.broadcast %46 : vector<1x8xf32> to vector<8x8xf32>
      %48 = arith.mulf %35, %47 : vector<8x8xf32>
      %cst_23 = arith.constant dense<0.000000e+00> : vector<16x8xf32>
      %49 = tpu.matmul %43, %48, %cst_23 {dimension_numbers = #tpu.dot_dimension_numbers<[1], [1], [0], [0], [0, 0, 1, 0], [], []>} : vector<16x8xf32>, vector<8x8xf32>, vector<16x8xf32> -> vector<16x8xf32>
      %c1 = arith.constant 1 : index
      %c0_24 = arith.constant 0 : index
      %c0_25 = arith.constant 0 : index
      %50 = vector.load %arg9[%c1, %c0_24, %c0_25] : memref<4x16x8xf32, #tpu.memory_space<vmem>>, vector<1x16x8xf32>
      %51 = vector.shape_cast %50 : vector<1x16x8xf32> to vector<16x8xf32>
      %52 = vector.extract_strided_slice %10 {offsets = [8, 0], sizes = [8, 8], strides = [1, 1]} : vector<32x8xf32> to vector<8x8xf32>
      %53 = vector.extract_strided_slice %13 {offsets = [8, 0], sizes = [8, 8], strides = [1, 1]} : vector<32x8xf32> to vector<8x8xf32>
      %cst_26 = arith.constant dense<0.000000e+00> : vector<16x8xf32>
      %54 = tpu.matmul %51, %52, %cst_26 {dimension_numbers = #tpu.dot_dimension_numbers<[1], [0], [0], [1], [0, 0, 1, 1], [], []>} : vector<16x8xf32>, vector<8x8xf32>, vector<16x8xf32> -> vector<16x8xf32>
      %cst_27 = arith.constant 0xFF800000 : f32
      %55 = vector.broadcast %cst_27 : f32 to vector<16x8xf32>
      %56 = arith.select %31, %54, %55 : vector<16x8xi1>, vector<16x8xf32>
      %cst_28 = arith.constant dense<0xFF800000> : vector<8xf32>
      %57 = vector.multi_reduction <maximumf>, %56, %cst_28 [0] : vector<16x8xf32> to vector<8xf32>
      %58 = vector.shape_cast %57 : vector<8xf32> to vector<1x8xf32>
      %59 = vector.broadcast %58 : vector<1x8xf32> to vector<16x8xf32>
      %60 = arith.subf %56, %59 : vector<16x8xf32>
      %61 = math.exp %60 : vector<16x8xf32>
      %cst_29 = arith.constant dense<0.000000e+00> : vector<8xf32>
      %62 = vector.multi_reduction <add>, %61, %cst_29 [0] : vector<16x8xf32> to vector<8xf32>
      %63 = vector.shape_cast %62 : vector<8xf32> to vector<1x8xf32>
      %64 = tpu.reciprocal %63 : vector<1x8xf32> -> vector<1x8xf32>
      %65 = vector.broadcast %64 : vector<1x8xf32> to vector<8x8xf32>
      %66 = arith.mulf %53, %65 : vector<8x8xf32>
      %cst_30 = arith.constant dense<0.000000e+00> : vector<16x8xf32>
      %67 = tpu.matmul %61, %66, %cst_30 {dimension_numbers = #tpu.dot_dimension_numbers<[1], [1], [0], [0], [0, 0, 1, 0], [], []>} : vector<16x8xf32>, vector<8x8xf32>, vector<16x8xf32> -> vector<16x8xf32>
      %c2 = arith.constant 2 : index
      %c0_31 = arith.constant 0 : index
      %c0_32 = arith.constant 0 : index
      %68 = vector.load %arg9[%c2, %c0_31, %c0_32] : memref<4x16x8xf32, #tpu.memory_space<vmem>>, vector<1x16x8xf32>
      %69 = vector.shape_cast %68 : vector<1x16x8xf32> to vector<16x8xf32>
      %70 = vector.extract_strided_slice %10 {offsets = [16, 0], sizes = [8, 8], strides = [1, 1]} : vector<32x8xf32> to vector<8x8xf32>
      %71 = vector.extract_strided_slice %13 {offsets = [16, 0], sizes = [8, 8], strides = [1, 1]} : vector<32x8xf32> to vector<8x8xf32>
      %cst_33 = arith.constant dense<0.000000e+00> : vector<16x8xf32>
      %72 = tpu.matmul %69, %70, %cst_33 {dimension_numbers = #tpu.dot_dimension_numbers<[1], [0], [0], [1], [0, 0, 1, 1], [], []>} : vector<16x8xf32>, vector<8x8xf32>, vector<16x8xf32> -> vector<16x8xf32>
      %cst_34 = arith.constant 0xFF800000 : f32
      %73 = vector.broadcast %cst_34 : f32 to vector<16x8xf32>
      %74 = arith.select %31, %72, %73 : vector<16x8xi1>, vector<16x8xf32>
      %cst_35 = arith.constant dense<0xFF800000> : vector<8xf32>
      %75 = vector.multi_reduction <maximumf>, %74, %cst_35 [0] : vector<16x8xf32> to vector<8xf32>
      %76 = vector.shape_cast %75 : vector<8xf32> to vector<1x8xf32>
      %77 = vector.broadcast %76 : vector<1x8xf32> to vector<16x8xf32>
      %78 = arith.subf %74, %77 : vector<16x8xf32>
      %79 = math.exp %78 : vector<16x8xf32>
      %cst_36 = arith.constant dense<0.000000e+00> : vector<8xf32>
      %80 = vector.multi_reduction <add>, %79, %cst_36 [0] : vector<16x8xf32> to vector<8xf32>
      %81 = vector.shape_cast %80 : vector<8xf32> to vector<1x8xf32>
      %82 = tpu.reciprocal %81 : vector<1x8xf32> -> vector<1x8xf32>
      %83 = vector.broadcast %82 : vector<1x8xf32> to vector<8x8xf32>
      %84 = arith.mulf %71, %83 : vector<8x8xf32>
      %cst_37 = arith.constant dense<0.000000e+00> : vector<16x8xf32>
      %85 = tpu.matmul %79, %84, %cst_37 {dimension_numbers = #tpu.dot_dimension_numbers<[1], [1], [0], [0], [0, 0, 1, 0], [], []>} : vector<16x8xf32>, vector<8x8xf32>, vector<16x8xf32> -> vector<16x8xf32>
      %c3 = arith.constant 3 : index
      %c0_38 = arith.constant 0 : index
      %c0_39 = arith.constant 0 : index
      %86 = vector.load %arg9[%c3, %c0_38, %c0_39] : memref<4x16x8xf32, #tpu.memory_space<vmem>>, vector<1x16x8xf32>
      %87 = vector.shape_cast %86 : vector<1x16x8xf32> to vector<16x8xf32>
      %88 = vector.extract_strided_slice %10 {offsets = [24, 0], sizes = [8, 8], strides = [1, 1]} : vector<32x8xf32> to vector<8x8xf32>
      %89 = vector.extract_strided_slice %13 {offsets = [24, 0], sizes = [8, 8], strides = [1, 1]} : vector<32x8xf32> to vector<8x8xf32>
      %cst_40 = arith.constant dense<0.000000e+00> : vector<16x8xf32>
      %90 = tpu.matmul %87, %88, %cst_40 {dimension_numbers = #tpu.dot_dimension_numbers<[1], [0], [0], [1], [0, 0, 1, 1], [], []>} : vector<16x8xf32>, vector<8x8xf32>, vector<16x8xf32> -> vector<16x8xf32>
      %cst_41 = arith.constant 0xFF800000 : f32
      %91 = vector.broadcast %cst_41 : f32 to vector<16x8xf32>
      %92 = arith.select %31, %90, %91 : vector<16x8xi1>, vector<16x8xf32>
      %cst_42 = arith.constant dense<0xFF800000> : vector<8xf32>
      %93 = vector.multi_reduction <maximumf>, %92, %cst_42 [0] : vector<16x8xf32> to vector<8xf32>
      %94 = vector.shape_cast %93 : vector<8xf32> to vector<1x8xf32>
      %95 = vector.broadcast %94 : vector<1x8xf32> to vector<16x8xf32>
      %96 = arith.subf %92, %95 : vector<16x8xf32>
      %97 = math.exp %96 : vector<16x8xf32>
      %cst_43 = arith.constant dense<0.000000e+00> : vector<8xf32>
      %98 = vector.multi_reduction <add>, %97, %cst_43 [0] : vector<16x8xf32> to vector<8xf32>
      %99 = vector.shape_cast %98 : vector<8xf32> to vector<1x8xf32>
      %100 = tpu.reciprocal %99 : vector<1x8xf32> -> vector<1x8xf32>
      %101 = vector.broadcast %100 : vector<1x8xf32> to vector<8x8xf32>
      %102 = arith.mulf %89, %101 : vector<8x8xf32>
      %cst_44 = arith.constant dense<0.000000e+00> : vector<16x8xf32>
      %103 = tpu.matmul %97, %102, %cst_44 {dimension_numbers = #tpu.dot_dimension_numbers<[1], [1], [0], [0], [0, 0, 1, 0], [], []>} : vector<16x8xf32>, vector<8x8xf32>, vector<16x8xf32> -> vector<16x8xf32>
      %104 = tpu.concatenate %49, %67, %85, %103 in 1 : vector<16x8xf32>, vector<16x8xf32>, vector<16x8xf32>, vector<16x8xf32> -> vector<16x32xf32>
      %c0_45 = arith.constant 0 : index
      %c0_46 = arith.constant 0 : index
      %105 = vector.load %arg8[%c0_45, %c0_46] : memref<16x32xf32, #tpu.memory_space<vmem>>, vector<16x32xf32>
      %106 = arith.addf %105, %104 : vector<16x32xf32>
      %c0_47 = arith.constant 0 : index
      %c0_48 = arith.constant 0 : index
      %107 = vector.load %arg8[%c0_47, %c0_48] : memref<16x32xf32, #tpu.memory_space<vmem>>, vector<16x32xf32>
      tpu.vector_store %arg8[%c0_47, %c0_48], %106 {strides = array<i32>} : memref<16x32xf32, #tpu.memory_space<vmem>>, vector<16x32xf32>,
    } else {
    }
    %c8_i32_12 = arith.constant 8 : i32
    %20 = arith.cmpi sge, %4, %c8_i32_12 : i32
    %21 = arith.extui %20 : i1 to i32
    %c0_i32_13 = arith.constant 0 : i32
    %22 = arith.cmpi ne, %21, %c0_i32_13 : i32
    scf.if %22 {
      %26 = tpu.iota {dimensions = array<i32: 0>} : vector<8x1xi32>
      %c8_i32_15 = arith.constant 8 : i32
      %27 = vector.broadcast %c8_i32_15 : i32 to vector<8x1xi32>
      %28 = arith.addi %26, %27 : vector<8x1xi32>
      %29 = vector.broadcast %28 : vector<8x1xi32> to vector<8x8xi32>
      %30 = vector.broadcast %16 : vector<1x8xi32> to vector<8x8xi32>
      %31 = arith.cmpi sge, %29, %30 : vector<8x8xi32>
      %c0_16 = arith.constant 0 : index
      %c8 = arith.constant 8 : index
      %c0_17 = arith.constant 0 : index
      %32 = vector.load %arg9[%c0_16, %c8, %c0_17] : memref<4x16x8xf32, #tpu.memory_space<vmem>>, vector<1x8x8xf32>
      %33 = vector.shape_cast %32 : vector<1x8x8xf32> to vector<8x8xf32>
      %34 = vector.extract_strided_slice %10 {offsets = [0, 0], sizes = [8, 8], strides = [1, 1]} : vector<32x8xf32> to vector<8x8xf32>
      %35 = vector.extract_strided_slice %13 {offsets = [0, 0], sizes = [8, 8], strides = [1, 1]} : vector<32x8xf32> to vector<8x8xf32>
      %cst_18 = arith.constant dense<0.000000e+00> : vector<8x8xf32>
      %36 = tpu.matmul %33, %34, %cst_18 {dimension_numbers = #tpu.dot_dimension_numbers<[1], [0], [0], [1], [0, 0, 1, 1], [], []>} : vector<8x8xf32>, vector<8x8xf32>, vector<8x8xf32> -> vector<8x8xf32>
      %cst_19 = arith.constant 0xFF800000 : f32
      %37 = vector.broadcast %cst_19 : f32 to vector<8x8xf32>
      %38 = arith.select %31, %36, %37 : vector<8x8xi1>, vector<8x8xf32>
      %cst_20 = arith.constant dense<0xFF800000> : vector<8xf32>
      %39 = vector.multi_reduction <maximumf>, %38, %cst_20 [0] : vector<8x8xf32> to vector<8xf32>
      %40 = vector.shape_cast %39 : vector<8xf32> to vector<1x8xf32>
      %41 = vector.broadcast %40 : vector<1x8xf32> to vector<8x8xf32>
      %42 = arith.subf %38, %41 : vector<8x8xf32>
      %43 = math.exp %42 : vector<8x8xf32>
      %cst_21 = arith.constant dense<0.000000e+00> : vector<8xf32>
      %44 = vector.multi_reduction <add>, %43, %cst_21 [0] : vector<8x8xf32> to vector<8xf32>
      %45 = vector.shape_cast %44 : vector<8xf32> to vector<1x8xf32>
      %46 = tpu.reciprocal %45 : vector<1x8xf32> -> vector<1x8xf32>
      %47 = vector.broadcast %46 : vector<1x8xf32> to vector<8x8xf32>
      %48 = arith.mulf %35, %47 : vector<8x8xf32>
      %cst_22 = arith.constant dense<0.000000e+00> : vector<8x8xf32>
      %49 = tpu.matmul %43, %48, %cst_22 {dimension_numbers = #tpu.dot_dimension_numbers<[1], [1], [0], [0], [0, 0, 1, 0], [], []>} : vector<8x8xf32>, vector<8x8xf32>, vector<8x8xf32> -> vector<8x8xf32>
      %c1 = arith.constant 1 : index
      %c8_23 = arith.constant 8 : index
      %c0_24 = arith.constant 0 : index
      %50 = vector.load %arg9[%c1, %c8_23, %c0_24] : memref<4x16x8xf32, #tpu.memory_space<vmem>>, vector<1x8x8xf32>
      %51 = vector.shape_cast %50 : vector<1x8x8xf32> to vector<8x8xf32>
      %52 = vector.extract_strided_slice %10 {offsets = [8, 0], sizes = [8, 8], strides = [1, 1]} : vector<32x8xf32> to vector<8x8xf32>
      %53 = vector.extract_strided_slice %13 {offsets = [8, 0], sizes = [8, 8], strides = [1, 1]} : vector<32x8xf32> to vector<8x8xf32>
      %cst_25 = arith.constant dense<0.000000e+00> : vector<8x8xf32>
      %54 = tpu.matmul %51, %52, %cst_25 {dimension_numbers = #tpu.dot_dimension_numbers<[1], [0], [0], [1], [0, 0, 1, 1], [], []>} : vector<8x8xf32>, vector<8x8xf32>, vector<8x8xf32> -> vector<8x8xf32>
      %cst_26 = arith.constant 0xFF800000 : f32
      %55 = vector.broadcast %cst_26 : f32 to vector<8x8xf32>
      %56 = arith.select %31, %54, %55 : vector<8x8xi1>, vector<8x8xf32>
      %cst_27 = arith.constant dense<0xFF800000> : vector<8xf32>
      %57 = vector.multi_reduction <maximumf>, %56, %cst_27 [0] : vector<8x8xf32> to vector<8xf32>
      %58 = vector.shape_cast %57 : vector<8xf32> to vector<1x8xf32>
      %59 = vector.broadcast %58 : vector<1x8xf32> to vector<8x8xf32>
      %60 = arith.subf %56, %59 : vector<8x8xf32>
      %61 = math.exp %60 : vector<8x8xf32>
      %cst_28 = arith.constant dense<0.000000e+00> : vector<8xf32>
      %62 = vector.multi_reduction <add>, %61, %cst_28 [0] : vector<8x8xf32> to vector<8xf32>
      %63 = vector.shape_cast %62 : vector<8xf32> to vector<1x8xf32>
      %64 = tpu.reciprocal %63 : vector<1x8xf32> -> vector<1x8xf32>
      %65 = vector.broadcast %64 : vector<1x8xf32> to vector<8x8xf32>
      %66 = arith.mulf %53, %65 : vector<8x8xf32>
      %cst_29 = arith.constant dense<0.000000e+00> : vector<8x8xf32>
      %67 = tpu.matmul %61, %66, %cst_29 {dimension_numbers = #tpu.dot_dimension_numbers<[1], [1], [0], [0], [0, 0, 1, 0], [], []>} : vector<8x8xf32>, vector<8x8xf32>, vector<8x8xf32> -> vector<8x8xf32>
      %c2 = arith.constant 2 : index
      %c8_30 = arith.constant 8 : index
      %c0_31 = arith.constant 0 : index
      %68 = vector.load %arg9[%c2, %c8_30, %c0_31] : memref<4x16x8xf32, #tpu.memory_space<vmem>>, vector<1x8x8xf32>
      %69 = vector.shape_cast %68 : vector<1x8x8xf32> to vector<8x8xf32>
      %70 = vector.extract_strided_slice %10 {offsets = [16, 0], sizes = [8, 8], strides = [1, 1]} : vector<32x8xf32> to vector<8x8xf32>
      %71 = vector.extract_strided_slice %13 {offsets = [16, 0], sizes = [8, 8], strides = [1, 1]} : vector<32x8xf32> to vector<8x8xf32>
      %cst_32 = arith.constant dense<0.000000e+00> : vector<8x8xf32>
      %72 = tpu.matmul %69, %70, %cst_32 {dimension_numbers = #tpu.dot_dimension_numbers<[1], [0], [0], [1], [0, 0, 1, 1], [], []>} : vector<8x8xf32>, vector<8x8xf32>, vector<8x8xf32> -> vector<8x8xf32>
      %cst_33 = arith.constant 0xFF800000 : f32
      %73 = vector.broadcast %cst_33 : f32 to vector<8x8xf32>
      %74 = arith.select %31, %72, %73 : vector<8x8xi1>, vector<8x8xf32>
      %cst_34 = arith.constant dense<0xFF800000> : vector<8xf32>
      %75 = vector.multi_reduction <maximumf>, %74, %cst_34 [0] : vector<8x8xf32> to vector<8xf32>
      %76 = vector.shape_cast %75 : vector<8xf32> to vector<1x8xf32>
      %77 = vector.broadcast %76 : vector<1x8xf32> to vector<8x8xf32>
      %78 = arith.subf %74, %77 : vector<8x8xf32>
      %79 = math.exp %78 : vector<8x8xf32>
      %cst_35 = arith.constant dense<0.000000e+00> : vector<8xf32>
      %80 = vector.multi_reduction <add>, %79, %cst_35 [0] : vector<8x8xf32> to vector<8xf32>
      %81 = vector.shape_cast %80 : vector<8xf32> to vector<1x8xf32>
      %82 = tpu.reciprocal %81 : vector<1x8xf32> -> vector<1x8xf32>
      %83 = vector.broadcast %82 : vector<1x8xf32> to vector<8x8xf32>
      %84 = arith.mulf %71, %83 : vector<8x8xf32>
      %cst_36 = arith.constant dense<0.000000e+00> : vector<8x8xf32>
      %85 = tpu.matmul %79, %84, %cst_36 {dimension_numbers = #tpu.dot_dimension_numbers<[1], [1], [0], [0], [0, 0, 1, 0], [], []>} : vector<8x8xf32>, vector<8x8xf32>, vector<8x8xf32> -> vector<8x8xf32>
      %c3 = arith.constant 3 : index
      %c8_37 = arith.constant 8 : index
      %c0_38 = arith.constant 0 : index
      %86 = vector.load %arg9[%c3, %c8_37, %c0_38] : memref<4x16x8xf32, #tpu.memory_space<vmem>>, vector<1x8x8xf32>
      %87 = vector.shape_cast %86 : vector<1x8x8xf32> to vector<8x8xf32>
      %88 = vector.extract_strided_slice %10 {offsets = [24, 0], sizes = [8, 8], strides = [1, 1]} : vector<32x8xf32> to vector<8x8xf32>
      %89 = vector.extract_strided_slice %13 {offsets = [24, 0], sizes = [8, 8], strides = [1, 1]} : vector<32x8xf32> to vector<8x8xf32>
      %cst_39 = arith.constant dense<0.000000e+00> : vector<8x8xf32>
      %90 = tpu.matmul %87, %88, %cst_39 {dimension_numbers = #tpu.dot_dimension_numbers<[1], [0], [0], [1], [0, 0, 1, 1], [], []>} : vector<8x8xf32>, vector<8x8xf32>, vector<8x8xf32> -> vector<8x8xf32>
      %cst_40 = arith.constant 0xFF800000 : f32
      %91 = vector.broadcast %cst_40 : f32 to vector<8x8xf32>
      %92 = arith.select %31, %90, %91 : vector<8x8xi1>, vector<8x8xf32>
      %cst_41 = arith.constant dense<0xFF800000> : vector<8xf32>
      %93 = vector.multi_reduction <maximumf>, %92, %cst_41 [0] : vector<8x8xf32> to vector<8xf32>
      %94 = vector.shape_cast %93 : vector<8xf32> to vector<1x8xf32>
      %95 = vector.broadcast %94 : vector<1x8xf32> to vector<8x8xf32>
      %96 = arith.subf %92, %95 : vector<8x8xf32>
      %97 = math.exp %96 : vector<8x8xf32>
      %cst_42 = arith.constant dense<0.000000e+00> : vector<8xf32>
      %98 = vector.multi_reduction <add>, %97, %cst_42 [0] : vector<8x8xf32> to vector<8xf32>
      %99 = vector.shape_cast %98 : vector<8xf32> to vector<1x8xf32>
      %100 = tpu.reciprocal %99 : vector<1x8xf32> -> vector<1x8xf32>
      %101 = vector.broadcast %100 : vector<1x8xf32> to vector<8x8xf32>
      %102 = arith.mulf %89, %101 : vector<8x8xf32>
      %cst_43 = arith.constant dense<0.000000e+00> : vector<8x8xf32>
      %103 = tpu.matmul %97, %102, %cst_43 {dimension_numbers = #tpu.dot_dimension_numbers<[1], [1], [0], [0], [0, 0, 1, 0], [], []>} : vector<8x8xf32>, vector<8x8xf32>, vector<8x8xf32> -> vector<8x8xf32>
      %104 = tpu.concatenate %49, %67, %85, %103 in 1 : vector<8x8xf32>, vector<8x8xf32>, vector<8x8xf32>, vector<8x8xf32> -> vector<8x32xf32>
      %c8_44 = arith.constant 8 : index
      %c0_45 = arith.constant 0 : index
      %105 = vector.load %arg8[%c8_44, %c0_45] : memref<16x32xf32, #tpu.memory_space<vmem>>, vector<8x32xf32>
      %106 = arith.addf %105, %104 : vector<8x32xf32>
      %c8_46 = arith.constant 8 : index
      %c0_47 = arith.constant 0 : index
      %107 = vector.load %arg8[%c8_46, %c0_47] : memref<16x32xf32, #tpu.memory_space<vmem>>, vector<8x32xf32>
      tpu.vector_store %arg8[%c8_46, %c0_47], %106 {strides = array<i32>} : memref<16x32xf32, #tpu.memory_space<vmem>>, vector<8x32xf32>,
    } else {
    }
    %c1_i32 = arith.constant 1 : i32
    %23 = arith.cmpi eq, %arg2, %c1_i32 : i32
    %24 = arith.extui %23 : i1 to i32
    %c0_i32_14 = arith.constant 0 : i32
    %25 = arith.cmpi ne, %24, %c0_i32_14 : i32
    scf.if %25 {
      %c0_15 = arith.constant 0 : index
      %c0_16 = arith.constant 0 : index
      %26 = vector.load %arg8[%c0_15, %c0_16] : memref<16x32xf32, #tpu.memory_space<vmem>>, vector<16x32xf32>
      %c0_17 = arith.constant 0 : index
      %c0_18 = arith.constant 0 : index
      %c0_19 = arith.constant 0 : index
      %27 = vector.load %arg7[%c0_17, %c0_18, %c0_19] : memref<1x16x32xf32, #tpu.memory_space<vmem>>, vector<1x16x32xf32>
      %28 = vector.shape_cast %27 : vector<1x16x32xf32> to vector<16x32xf32>
      %29 = vector.shape_cast %26 : vector<16x32xf32> to vector<1x16x32xf32>
      tpu.vector_store %arg7[%c0_17, %c0_18, %c0_19], %29 {strides = array<i32>} : memref<1x16x32xf32, #tpu.memory_space<vmem>>, vector<1x16x32xf32>,
    } else {
    }
    return
  }
  func.func @transform_0(%arg0: i32, %arg1: i32, %arg2: i32) -> (i32, i32, i32) {
    %c0_i32 = arith.constant 0 : i32
    %c0_i32_0 = arith.constant 0 : i32
    %c0_i32_1 = arith.constant 0 : i32
    return %arg0, %c0_i32, %c0_i32_0 : i32, i32, i32
  }
  func.func @transform_1(%arg0: i32, %arg1: i32, %arg2: i32) -> (i32, i32, i32) {
    %c0_i32 = arith.constant 0 : i32
    %c0_i32_0 = arith.constant 0 : i32
    %c0_i32_1 = arith.constant 0 : i32
    return %arg1, %c0_i32, %c0_i32_0 : i32, i32, i32
  }
  func.func @transform_2(%arg0: i32, %arg1: i32, %arg2: i32) -> (i32, i32, i32) {
    %c0_i32 = arith.constant 0 : i32
    %c0_i32_0 = arith.constant 0 : i32
    %c0_i32_1 = arith.constant 0 : i32
    return %arg1, %c0_i32, %c0_i32_0 : i32, i32, i32
  }
  func.func @transform_3(%arg0: i32, %arg1: i32, %arg2: i32) -> (i32, i32, i32) {
    %c0_i32 = arith.constant 0 : i32
    %c0_i32_0 = arith.constant 0 : i32
    %c0_i32_1 = arith.constant 0 : i32
    return %arg1, %c0_i32, %c0_i32_0 : i32, i32, i32
  }
  func.func @transform_4(%arg0: i32, %arg1: i32, %arg2: i32) -> (i32, i32, i32) {
    %c0_i32 = arith.constant 0 : i32
    %c0_i32_0 = arith.constant 0 : i32
    return %arg0, %c0_i32, %arg1 : i32, i32, i32
  }
}

</mosaic_0001>

<bundles_post_ra>
// kernel: tpu_custom_call.1
= control target key start
LH: loop header
LB: loop body
LE: loop exit
PB: predicated region body
PF: predicated region fallthrough
CT: control target
= control target key end

     0   :  { %s3429_s0 = inlined_call_operand.hbm [shape: f32[2,16,32], index: 0, kind: input, shape index: {}]   ;;  %s3430_s1 = inlined_call_operand.hbm [shape: f32[1,32,32], index: 1, kind: input, shape index: {}]   ;;  %s3431_s2 = inlined_call_operand.hbm [shape: f32[1,32,32], index: 2, kind: input, shape index: {}]   ;;  %s3432_s3 = inlined_call_operand.hbm [shape: f32[1,32,32], index: 3, kind: input, shape index: {}]   ;;  %s3433_s4 = inlined_call_operand.hbm [shape: f32[2,16,32], index: 4, kind: output, shape index: {}]  }
   0x1   :  { %3437 = sst [smem:[#allocation17_spill]] %s3430_s1 }
   0x2   :  { %3438 = sst [smem:[#allocation18_spill]] %s3431_s2 }
   0x3   :  { %9 = vsyncpa [#allocation5], 0 }
   0x4   :  { %11 = vsyncpa [#allocation5 + $0x1], 0 }
   0x5   :  { %12 = vsyncpa [#allocation8], 0 }
   0x6   :  { %13 = vsyncpa [#allocation11], 0 }
   0x7   :  { %14 = vsyncpa [#allocation6], 0 }
   0x8   :  { %16 = vsyncpa [#allocation6 + $0x1], 0  ;;  %s2996_s15 = smov 0   ;;  %s2998_s16 = smov 0  }
   0x9   :  { %s3000_s17 = smov 0   ;;  %s3002_s18 = smov 0  }
   0xa   :  { %s3004_s19 = smov 0   ;;  %s3006_s20 = smov 0  }
   0xb   :  { %s3008_s21 = smov 0   ;;  %s3010_s22 = smov 0  }
   0xc LB: > { %s2338_s23 = sadd.s32 4294967295, %s2948_s22   ;;  %s2339_s24 = sadd.s32 4294967294, %s2948_s22   ;;  %s2948_s22 = sphi %s3010_s22, %s22_s22   ;;  %s2944_s21 = sphi %s3008_s21, %s3459_s21   ;;  %s2940_s20 = sphi %s3006_s20, %s3458_s20   ;;  %s2936_s19 = sphi %s3004_s19, %s3457_s19   ;;  %s2932_s18 = sphi %s3002_s18, %s3456_s18   ;;  %s2928_s17 = sphi %s3000_s17, %s3455_s17   ;;  %s2924_s16 = sphi %s2998_s16, %s3454_s16   ;;  %s2920_s15 = sphi %s2996_s15, %s3453_s15  }
   0xd   : > { %p61_p0 = scmp.ne.s32.totalorder %s2924_s16, %s2920_s15  ;;  %p3040_p1 = scmp.eq.s32.totalorder %s2338_s23, 0 }
   0xe   : > { %p3044_p2 = scmp.eq.s32.totalorder %s2338_s23, 3  ;;  %p171_p3 = scmp.eq.s32.totalorder %s2339_s24, 3 }
   0xf   : > { %p3050_p4 = por %p3040_p1, %p61_p0  ;;  %p2340_p5 = scmp.ge.s32.totalorder %s2948_s22, 1 }
  0x10   : > { %p3055_p6 = por %p171_p3, %p61_p0  ;;  %p178_p7 = scmp.lt.s32.totalorder %s2948_s22, 5 }
  0x11   : > { %s2950_s30 = smov [#allocation7]   ;;  %s2951_s7 = smov [#allocation9]  }
  0x12   : > { %s3442_s28 = scalar_select %p3055_p6, 1, 0 }
  0x13   : > { %p3060_p8 = pnand %p2340_p5, %p178_p7  ;;  %s193_s5 = sshll.u32 %s2950_s30, 4  ;;  %s194_s5 = int_to_ptr.vmem [resolvable:$true] %s193_s5 }
  0x14   : > { %s209_s8 = sshll.u32 %s2951_s7, 4  ;;  %s2952_s9 = smov [#allocation10]   ;;  %s210_s8 = int_to_ptr.vmem [resolvable:$true] %s209_s8 }
  0x15   : > { %p2589_p9 = pneg %p3060_p8  ;;  %s225_s10 = sshll.u32 %s2952_s9, 4  ;;  %s226_s10 = int_to_ptr.vmem [resolvable:$true] %s225_s10 }
  0x16   : > { %s2749_s11 = scalar_lea.vmem %s194_s5, 512  ;;  %p2757_p3 = scmp.lt.s32.totalorder %s194_s5, %s194_s5 }
  0x17   : > { %p3068_p10 = pnand %p2589_p9, %p3040_p1  ;;  %p2750_p12 = scmp.ne.s32.totalorder %s194_s5, %s2749_s11 }
  0x18   : > { %p2758_p5 = scmp.lt.s32.totalorder %s2749_s11, %s2749_s11 }
  0x19   : > { %p2740_p11 = pneg %p3068_p10 }
  0x1a   : > { %p2759_p7 = por %p2758_p5, %p2757_p3 }
  0x1b   : > { %p2752_p13 = pnand %p2750_p12, %p2740_p11 }
  0x1d   : > { %p2753_p0 = pneg %p2752_p13 }
  0x1f   : > { %p2760_p9 = pnand %p2759_p7, %p2753_p0 }
  0x21   : > { %2763 = shalt.err (!%p2760_p9)
}
  0x22   : > { %s3434_s12 = smov 128   ;;  %s3435_s13 = smov 8  }
  0x23   : > { %s3445_s1 = sld [smem:[#allocation17_spill]]  ;;  %s2775_s24 = scalar_lea.vmem %s210_s8, 512 }
  0x24   : > { %p2776_p12 = scmp.ne.s32.totalorder %s210_s8, %s2775_s24  ;;  %p2783_p0 = scmp.lt.s32.totalorder %s210_s8, %s210_s8 }
  0x25   : > { %p2784_p5 = scmp.lt.s32.totalorder %s2775_s24, %s2775_s24 }
  0x26   : > { %p2778_p13 = pnand %p2776_p12, %p2740_p11 }
  0x27   : > { %p2785_p7 = por %p2784_p5, %p2783_p0 }
  0x28   : > { %p2779_p3 = pneg %p2778_p13 }
  0x29   : > { %2592 = dma.hbm_to_vmem [thread:$0]  (!%p3068_p10), %s3445_s1, 512, %s194_s5, [#allocation8], %s3434_s12, %s3434_s12, %s3435_s13  }
  0x2a   : > { %p2786_p9 = pnand %p2785_p7, %p2779_p3 }
  0x2c   : > { %2789 = shalt.err (!%p2786_p9)
}
  0x2d   : > { %s3446_s2 = sld [smem:[#allocation18_spill]]  ;;  %s2801_s5 = scalar_lea.vmem %s226_s10, 512 }
  0x2e   : > { %p2802_p6 = scmp.ne.s32.totalorder %s226_s10, %s2801_s5  ;;  %p2809_p0 = scmp.lt.s32.totalorder %s226_s10, %s226_s10 }
  0x2f   : > { %p2810_p3 = scmp.lt.s32.totalorder %s2801_s5, %s2801_s5 }
  0x30   : > { %p2804_p12 = pnand %p2802_p6, %p2740_p11 }
  0x31   : > { %p2811_p5 = por %p2810_p3, %p2809_p0 }
  0x32   : > { %p2805_p13 = pneg %p2804_p12 }
  0x33   : > { %2595 = dma.hbm_to_vmem [thread:$0]  (!%p3068_p10), %s3446_s2, 512, %s210_s8, [#allocation8], %s3434_s12, %s3434_s12, %s3435_s13  }
  0x34   : > { %p2812_p7 = pnand %p2811_p5, %p2805_p13 }
  0x36   : > { %2815 = shalt.err (!%p2812_p7)
}
  0x37   : > { %2598 = dma.hbm_to_vmem [thread:$0]  (!%p3068_p10), %s3432_s3, 512, %s226_s10, [#allocation11], %s3434_s12, %s3434_s12, %s3435_s13  }
  0x38   : > { %s34_s8 = sadd.s32 1, %s2940_s20  ;;  %s41_s6 = sadd.s32 1, %s2944_s21 }
  0x39   : > { %p35_p6 = scmp.ge.s32.totalorder %s34_s8, 2  ;;  %s48_s14 = sadd.s32 1, %s2928_s17 }
  0x3a   : > { %p55_p11 = scmp.ne.s32.totalorder %s2928_s17, %s2924_s16  ;;  %p56_p9 = scmp.eq.s32.totalorder %s2948_s22, 0 }
  0x3b   : > { %s3461_s8 = smov (%p35_p6, %s34_s8), 0  ;;  %s3463_s6 = smov (!%p35_p6, %s41_s6), %s2944_s21 }
  0x3c   : > { %p3118_p12 = por %p3044_p2, %p55_p11  ;;  %p43_p13 = scmp.ge.s32.totalorder %s3463_s6, 2 }
  0x3d   : > { %p2610_p10 = scmp.lt.s32.totalorder %s2948_s22, 4  ;;  %p57_p0 = por %p56_p9, %p55_p11 }
  0x3e   : > { %s3447_s23 = scalar_select %p3118_p12, 1, 0 }
  0x3f   : > { %s239_s10 = sand.u32 1, %s2928_s17   ;;  %s3465_s6 = smov (%p43_p13, %s3463_s6), 0 }
  0x40   : > { %s2345_s24 = sshll.u32 %s239_s10, 4  ;;  %s45_s30 = ssub.s32 %s2944_s21, %s3465_s6 }
  0x41   : > { %p46_p3 = scmp.eq.s32.totalorder %s45_s30, 0  ;;  %s2408_s7 = sshll.u32 %s2944_s21, 8 }
  0x42   : > { %s249_s26 = scalar_lea.hbm %s3429_s0, %s2408_s7  ;;  %s243_s11 = scalar_lea.vmem [#allocation4], %s2345_s24 }
  0x43   : > { %s250_s12 = sshll.u32 %s243_s11, 4  ;;  %p3137_p2 = pnand %p2610_p10, %p57_p0  ;;  %s251_s12 = int_to_ptr.vmem [resolvable:$true] %s250_s12 }
  0x44   : > { %s3133_s13 = scalar_select %p46_p3, %s2928_s17, %s48_s14  }
  0x45   : > { %s240_s2 = scalar_lea.sflag [#allocation5], %s239_s10  ;;  %p2818_p5 = pneg %p3137_p2 }
  0x46   : > { %s2829_s30 = scalar_lea.vmem %s251_s12, 256  ;;  %s2955_s5 = smov [#allocation4]  }
  0x47   : > { %p2830_p7 = scmp.ne.s32.totalorder %s251_s12, %s2829_s30  ;;  %s2834_s7 = sshll.u32 %s2955_s5, 4  ;;  %s2835_s7 = int_to_ptr.vmem [resolvable:$false] %s2834_s7 }
  0x48   : > { %s2836_s24 = scalar_lea.vmem %s2835_s7, 512  ;;  %p2837_p9 = scmp.lt.s32.totalorder %s251_s12, %s2835_s7 }
  0x49   : > { %p2832_p6 = pnand %p2830_p7, %p2818_p5  ;;  %p2838_p13 = scmp.lt.s32.totalorder %s2836_s24, %s2829_s30 }
  0x4b   : > { %p2833_p11 = pneg %p2832_p6  ;;  %p2839_p3 = por %p2838_p13, %p2837_p9 }
  0x4d   : > { %p2840_p12 = pnand %p2839_p3, %p2833_p11 }
  0x4f   : > { %2843 = shalt.err (!%p2840_p12)
}
  0x50   : > { %s3449_s14 = smov 8   ;;  %s3450_s9 = smov 128  }
  0x51   : > { %2602 = dma.hbm_to_vmem [thread:$0]  (!%p3137_p2), %s249_s26, 256, %s251_s12, %s240_s2, %s3450_s9, %s3450_s9, %s3449_s14  }
  0x52   : > { %262 = sbr.rel (%p3060_p8) target bundleno = 1853 (0x73d), region = 36  ;;  %s3151_s10 = sand.u32 (!%p3060_p8), 1, %s2924_s16  }
  0x53   : > { %s2349_s11 = sshll.u32 (!%p3060_p8), %s3151_s10, 4  ;;  %s265_s30 = scalar_lea.sflag (!%p3060_p8), [#allocation5], %s3151_s10 }
  0x54   : > { %s3155_s5 = scalar_lea.vmem (!%p3060_p8), [#allocation4], %s2349_s11 }
  0x57   : > { %2903 = dma.done.wait (%p3050_p4), %s265_s30, 256  }
  0x58   : > { %2905 = vsyncadd (%p3050_p4), %s265_s30, 4294967040 }
  0x59   : > { %2907 = dma.done.wait (%p3040_p1), [#allocation8], 1024  }
  0x5a   : > { %2909 = vsyncadd (%p3040_p1), [#allocation8], 4294966272 }
  0x5b   : > { %2911 = dma.done.wait (%p3040_p1), [#allocation11], 512  }
  0x5c   : > { %2913 = vsyncadd (%p3040_p1), [#allocation11], 4294966784  ;;  %s3169_s1 = scalar_lea.vmem [#allocation12], %s2349_s11  ;;  %p2354_p8 = scmp.ne.s32.totalorder %s2932_s18, 0 }
  0x5d   : > { %s2957_s2 = smov (!%p2354_p8), 112   ;;  %s2958_s25 = smov (!%p2354_p8), 120  }
  0x5e   : > { %308 = sbr.rel (%p2354_p8) target bundleno = 427 (0x1ab), region = 56  ;;  %s2959_s27 = smov (!%p2354_p8), 104  }
  0x63   : > { %v314_v0 = vld [vmem:[#allocation7 + $0x18] sm:$0xff]  ;;  %v313_v1 = vld [vmem:[#allocation7 + $0x10] sm:$0xff]  ;;  %vm315_vm0 = vcmask 261120   ;;  %v2956_v3 = vmov 0.0   ;;  %v312_v4 = vld [vmem:[#allocation7 + $0x8] sm:$0xff]  ;;  %vm399_vm1 = vcmask 64512  }
  0x64   : > { %2466 = vmatprep.subr.mxu0 %v314_v0  ;;  %v309_v2 = vld [vmem:[%s3155_s5] sm:$0xff]  ;;  %431 = vst.msk [vmem:[#allocation2] sm:$0xff] %vm315_vm0, %v2956_v3  ;;  %432 = vst.msk [vmem:[#allocation2 + $0x8] sm:$0xff] %vm315_vm0, %v2956_v3  ;;  %v310_v6 = vld [vmem:[%s3155_s5 + $0x8] sm:$0xff] }
  0x65   : > { %2467 = vmatpush3.msra.mxu0 %v314_v0  ;;  %2474 = vmatprep.mubr.msk.f32.mxu0 %vm315_vm0, %v309_v2  ;;  %v311_v5 = vld [vmem:[#allocation7] sm:$0xff] }
  0x66   : > { %2468 = vmatprep.subr.mxu0 %v313_v1 }
  0x67   : > { %2469 = vmatpush3.msra.mxu0 %v313_v1 }
  0x68   : > { %2470 = vmatprep.subr.mxu0 %v312_v4 }
  0x69   : > { %2471 = vmatpush3.msra.mxu0 %v312_v4 }
  0x6a   : > { %2472 = vmatprep.subr.mxu0 %v311_v5 }
  0x6b   : > { %2473 = vmatpush3.msra.mxu0 %v311_v5 }
  0x6c   : > { %2475 = vmatmul.mubr.msk.f32.vlgmr.msra.gmra.mxu0 %vm315_vm0, %v310_v6 }
 0x12c   : > { %v2476_v7 = vpop.f32.mrf.mxu0 }
 0x12d   : > { %v398_v8 = vmul.f32 0.25, %v2476_v7 }
 0x12e   : > { %v388_v9 = vpop.f32.mrf.mxu0 }
 0x12f   : > { %401 = vst.msk [vmem:[#allocation3 + $0x8] sm:$0xff] %vm399_vm1, %v398_v8  ;;  %v397_v10 = vmul.f32 0.25, %v388_v9  ;;  %415 = vrot.lane.b32.xlu1 %v398_v8, %s2957_s2  ;;  %406 = vrot.lane.b32.xlu0 %v398_v8, %s2958_s25 }
 0x131   : > { %400 = vst.msk [vmem:[#allocation3] sm:$0xff] %vm399_vm1, %v397_v10 }
 0x133   : > { %413 = vrot.lane.b32.xlu1 %v397_v10, %s2957_s2  ;;  %404 = vrot.lane.b32.xlu0 %v397_v10, %s2958_s25 }
 0x137   : > { %424 = vrot.lane.b32.xlu1 %v398_v8, %s2959_s27  ;;  %422 = vrot.lane.b32.xlu0 %v397_v10, %s2959_s27 }
 0x1a1   : > { %v416_v11 = vpop.permute.xlu1 %415  ;;  %v407_v12 = vpop.permute.xlu0 %406 }
 0x1a2   : > { %421 = vst.msk [vmem:[#allocation3 + $0x28] sm:$0xff] %vm399_vm1, %v416_v11  ;;  %412 = vst.msk [vmem:[#allocation3 + $0x18] sm:$0xff] %vm399_vm1, %v407_v12 }
 0x1a5   : > { %v414_v13 = vpop.permute.xlu1 %413  ;;  %v405_v14 = vpop.permute.xlu0 %404 }
 0x1a6   : > { %420 = vst.msk [vmem:[#allocation3 + $0x20] sm:$0xff] %vm399_vm1, %v414_v13  ;;  %411 = vst.msk [vmem:[#allocation3 + $0x10] sm:$0xff] %vm399_vm1, %v405_v14 }
 0x1a9   : > { %v425_v15 = vpop.permute.xlu1 %424  ;;  %v423_v16 = vpop.permute.xlu0 %422 }
 0x1aa   : > { %430 = vst.msk [vmem:[#allocation3 + $0x38] sm:$0xff] %vm399_vm1, %v425_v15  ;;  %429 = vst.msk [vmem:[#allocation3 + $0x30] sm:$0xff] %vm399_vm1, %v423_v16 }
 0x1ab PF: > { %s3187_s29 = sshll.u32 %s2932_s18, 3  ;;  %vm440_vm2 = vcmask 261120   ;;  %v642_v17 = vlaneseq  ;;  %v436_v18 = vld [vmem:[#allocation9] sm:$0xff]  ;;  %v437_v24 = vld [vmem:[#allocation9 + $0x8] sm:$0xff]  ;;  %v438_v26 = vld [vmem:[#allocation9 + $0x10] sm:$0xff] }
 0x1ac   : > { %v541_v19 = vld [vmem:[#allocation10] sm:$0xff]  ;;  %s434_s12 = scalar_lea.vmem %s3155_s5, %s3187_s29 [#allocation4]  ;;  %v644_v20 = vstv %s3187_s29  ;;  %2479 = vmatprep.mubr.msk.f32.mxu0 %vm440_vm2, %v436_v18  ;;  %v542_v25 = vld [vmem:[#allocation10 + $0x8] sm:$0xff]  ;;  %v543_v27 = vld [vmem:[#allocation10 + $0x10] sm:$0xff]  ;;  %p2368_p1 = scmp.ge.s32.totalorder %s3187_s29, 8 }
 0x1ad   : > { %2487 = vmatprep.mubr.msk.f32.mxu1 %vm440_vm2, %v541_v19  ;;  %v435_v21 = vld [vmem:[%s434_s12] sm:$0xff]  ;;  %v643_v22 = vand.u32 127, %v642_v17  ;;  %v439_v28 = vld [vmem:[#allocation9 + $0x18] sm:$0xff]  ;;  %s2960_s26 = smov (!%p2368_p1), 8   ;;  %s2961_s7 = smov (!%p2368_p1), 16  }
 0x1ae   : > { %2477 = vmatprep.subr.msk.mxu0 %vm440_vm2, %v435_v21  ;;  %2485 = vmatprep.subr.msk.mxu1 %vm440_vm2, %v435_v21  ;;  %v544_v29 = vld [vmem:[#allocation10 + $0x18] sm:$0xff]  ;;  %s2962_s24 = smov (!%p2368_p1), 24  }
 0x1af   : > { %v3197_v23 = vadd.s32 %v644_v20, %v643_v22  ;;  %2478 = vmatpush3.xpose.msk.msra.mxu0 %vm440_vm2, %v435_v21  ;;  %2486 = vmatpush3.xpose.msk.msra.mxu1 %vm440_vm2, %v435_v21 }
 0x1b2   : > { %2480 = vmatmul.mubr.msk.f32.vlgmr.msra.gmra.mxu0 %vm440_vm2, %v437_v24  ;;  %2488 = vmatmul.mubr.msk.f32.vlgmr.msra.gmra.mxu1 %vm440_vm2, %v542_v25 }
 0x1b3   : > { %2482 = vmatprep.mubr.msk.f32.mxu0 %vm440_vm2, %v438_v26  ;;  %2490 = vmatprep.mubr.msk.f32.mxu1 %vm440_vm2, %v543_v27 }
 0x1b6   : > { %2483 = vmatmul.mubr.msk.f32.gmra.mxu0 %vm440_vm2, %v439_v28  ;;  %2491 = vmatmul.mubr.msk.f32.gmra.mxu1 %vm440_vm2, %v544_v29 }
 0x272   : > { %v3207_v30 = vpop.f32.mrf.mxu0  ;;  %v3209_v31 = vpop.f32.mrf.mxu1 }
 0x274   : > { %v3211_v32 = vpop.f32.mrf.mxu0  ;;  %v3213_v33 = vpop.f32.mrf.mxu1  ;;  %649 = sbr.rel (%p2368_p1) target bundleno = 1228 (0x4cc), region = 60 }
 0x276   : > { %v3215_v34 = vpop.f32.mrf.mxu0  ;;  %v3217_v35 = vpop.f32.mrf.mxu1 }
 0x278   : > { %v3219_v36 = vpop.f32.mrf.mxu0  ;;  %v3221_v37 = vpop.f32.mrf.mxu1 }
 0x279   : > { %2493 = vmatprep.subr.mxu0 %v3211_v32  ;;  %v655_v38 = vld [vmem:[#allocation3] sm:$0xff]  ;;  %vm657_vm3 = vcmask 64512   ;;  %v656_v39 = vld [vmem:[#allocation3 + $0x8] sm:$0xff]  ;;  %v852_v40 = vld [vmem:[#allocation3 + $0x10] sm:$0xff]  ;;  %v651_v46 = vshrl.u32 %v642_v17, 7  ;;  %vm1465_vm6 = vcmask 130048  }
 0x27a   : > { %2494 = vmatpush3.msra.mxu0 %v3211_v32  ;;  %2495 = vmatprep.mubr.msk.f32.mxu0 %vm657_vm3, %v655_v38  ;;  %v853_v41 = vld [vmem:[#allocation3 + $0x18] sm:$0xff]  ;;  %v1048_v42 = vld [vmem:[#allocation3 + $0x20] sm:$0xff]  ;;  %v1049_v43 = vld [vmem:[#allocation3 + $0x28] sm:$0xff]  ;;  %vm1468_vm7 = vcmask 195584  }
 0x27b   : > { %2496 = vmatmul.mubr.msk.f32.vlgmr.msra.gmra.mxu0 %vm657_vm3, %v656_v39  ;;  %2503 = vmatprep.subr.mxu0 %v3207_v30  ;;  %v1244_v44 = vld [vmem:[#allocation3 + $0x30] sm:$0xff]  ;;  %v1245_v45 = vld [vmem:[#allocation3 + $0x38] sm:$0xff]  ;;  %v652_v47 = vadd.s32 8, %v651_v46  ;;  %vm653_vm5 = vcmp.ge.s32.totalorder %v651_v46, %v3197_v23 }
 0x27c   : > { %2504 = vmatpush3.msra.mxu0 %v3207_v30  ;;  %2505 = vmatprep.mubr.msk.f32.mxu0 %vm657_vm3, %v852_v40 }
 0x27d   : > { %2513 = vmatprep.subr.mxu0 %v3219_v36  ;;  %vm654_vm4 = vcmp.ge.s32.totalorder %v652_v47, %v3197_v23 }
 0x27f   : > { %2506 = vmatmul.mubr.msk.f32.vlgmr.msra.gmra.mxu0 %vm657_vm3, %v853_v41 }
 0x280   : > { %2514 = vmatpush3.msra.mxu0 %v3219_v36  ;;  %2515 = vmatprep.mubr.msk.f32.mxu0 %vm657_vm3, %v1048_v42 }
 0x281   : > { %2523 = vmatprep.subr.mxu0 %v3215_v34 }
 0x283   : > { %2516 = vmatmul.mubr.msk.f32.vlgmr.msra.gmra.mxu0 %vm657_vm3, %v1049_v43 }
 0x284   : > { %2524 = vmatpush3.msra.mxu0 %v3215_v34  ;;  %2525 = vmatprep.mubr.msk.f32.mxu0 %vm657_vm3, %v1244_v44 }
 0x287   : > { %2526 = vmatmul.mubr.msk.f32.vlgmr.msra.gmra.mxu0 %vm657_vm3, %v1245_v45 }
 0x33b   : > { %v2497_v48 = vpop.f32.mrf.mxu0 }
 0x33c   : > { %v740_v49 = vsel %vm654_vm4, %v2497_v48, -inf }
 0x33d   : > { %v730_v50 = vpop.f32.mrf.mxu0  ;;  %v742_v52 = vsel %vm657_vm3, %v740_v49, -inf }
 0x33e   : > { %v739_v51 = vsel %vm653_vm5, %v730_v50, -inf }
 0x33f   : > { %v741_v53 = vsel %vm657_vm3, %v739_v51, -inf  ;;  %v2507_v54 = vpop.f32.mrf.mxu0 }
 0x340   : > { %v743_v55 = vmax.f32 %v741_v53, %v742_v52  ;;  %v936_v56 = vsel %vm654_vm4, %v2507_v54, -inf }
 0x341   : > { %v926_v57 = vpop.f32.mrf.mxu0  ;;  %v938_v60 = vsel %vm657_vm3, %v936_v56, -inf }
 0x342   : > { %v744_v58 = vrot.slane %v743_v55, 4  ;;  %v935_v59 = vsel %vm653_vm5, %v926_v57, -inf }
 0x343   : > { %v937_v61 = vsel %vm657_vm3, %v935_v59, -inf  ;;  %v2517_v62 = vpop.f32.mrf.mxu0 }
 0x344   : > { %v745_v63 = vmax.f32 %v743_v55, %v744_v58  ;;  %v939_v0 = vmax.f32 %v937_v61, %v938_v60  ;;  %v1132_v1 = vsel %vm654_vm4, %v2517_v62, -inf }
 0x345   : > { %v1122_v2 = vpop.f32.mrf.mxu0  ;;  %v1134_v6 = vsel %vm657_vm3, %v1132_v1, -inf }
 0x346   : > { %v746_v3 = vrot.slane %v745_v63, 2  ;;  %v940_v4 = vrot.slane %v939_v0, 4  ;;  %v1131_v5 = vsel %vm653_vm5, %v1122_v2, -inf }
 0x347   : > { %v1133_v7 = vsel %vm657_vm3, %v1131_v5, -inf  ;;  %v2527_v8 = vpop.f32.mrf.mxu0 }
 0x348   : > { %v747_v9 = vmax.f32 %v745_v63, %v746_v3  ;;  %v941_v10 = vmax.f32 %v939_v0, %v940_v4  ;;  %v1135_v11 = vmax.f32 %v1133_v7, %v1134_v6  ;;  %v1328_v12 = vsel %vm654_vm4, %v2527_v8, -inf }
 0x349   : > { %v1330_v13 = vsel %vm657_vm3, %v1328_v12, -inf  ;;  %v1318_v14 = vpop.f32.mrf.mxu0 }
 0x34a   : > { %v748_v15 = vrot.slane %v747_v9, 1  ;;  %v942_v16 = vrot.slane %v941_v10, 2  ;;  %v1136_v18 = vrot.slane %v1135_v11, 4  ;;  %v1327_v19 = vsel %vm653_vm5, %v1318_v14, -inf }
 0x34b   : > { %v1329_v20 = vsel %vm657_vm3, %v1327_v19, -inf }
 0x34c   : > { %v749_v21 = vmax.f32 %v747_v9, %v748_v15  ;;  %v943_v22 = vmax.f32 %v941_v10, %v942_v16  ;;  %v1137_v24 = vmax.f32 %v1135_v11, %v1136_v18  ;;  %v1331_v25 = vmax.f32 %v1329_v20, %v1330_v13 }
 0x34e   : > { %v750_v26 = vsub.f32 %v739_v51, %v749_v21  ;;  %v751_v27 = vsub.f32 %v740_v49, %v749_v21  ;;  %v944_v28 = vrot.slane %v943_v22, 1  ;;  %v1138_v29 = vrot.slane %v1137_v24, 2 }
 0x34f   : > { %v1332_v38 = vrot.slane %v1331_v25, 4 }
 0x350   : > { %v752_v39 = vmul.f32 1.442695, %v750_v26  ;;  %v754_v40 = vmul.f32 1.442695, %v751_v27  ;;  %v945_v41 = vmax.f32 %v943_v22, %v944_v28  ;;  %v1139_v42 = vmax.f32 %v1137_v24, %v1138_v29 }
 0x351   : > { %v1333_v43 = vmax.f32 %v1331_v25, %v1332_v38 }
 0x352   : > { %2698 = vpow2.f32 %v752_v39  ;;  %v946_v44 = vsub.f32 %v935_v59, %v945_v41  ;;  %v947_v45 = vsub.f32 %v936_v56, %v945_v41  ;;  %v1140_v46 = vrot.slane %v1139_v42, 1 }
 0x353   : > { %2700 = vpow2.f32 %v754_v40  ;;  %v1334_v47 = vrot.slane %v1333_v43, 2 }
 0x354   : > { %v948_v48 = vmul.f32 1.442695, %v946_v44  ;;  %v950_v50 = vmul.f32 1.442695, %v947_v45  ;;  %v1141_v52 = vmax.f32 %v1139_v42, %v1140_v46 }
 0x355   : > { %v1335_v53 = vmax.f32 %v1333_v43, %v1334_v47 }
 0x356   : > { %2702 = vpow2.f32 %v948_v48  ;;  %v1142_v49 = vsub.f32 %v1131_v5, %v1141_v52  ;;  %v1143_v51 = vsub.f32 %v1132_v1, %v1141_v52 }
 0x357   : > { %2704 = vpow2.f32 %v950_v50  ;;  %v1336_v54 = vrot.slane %v1335_v53, 1 }
 0x358   : > { %v1144_v55 = vmul.f32 1.442695, %v1142_v49  ;;  %v1146_v57 = vmul.f32 1.442695, %v1143_v51 }
 0x359   : > { %v1337_v58 = vmax.f32 %v1335_v53, %v1336_v54 }
 0x35a   : > { %2706 = vpow2.f32 %v1144_v55 }
 0x35b   : > { %2708 = vpow2.f32 %v1146_v57  ;;  %v1338_v60 = vsub.f32 %v1327_v19, %v1337_v58  ;;  %v1339_v59 = vsub.f32 %v1328_v12, %v1337_v58 }
 0x35d   : > { %v1340_v56 = vmul.f32 1.442695, %v1338_v60  ;;  %v1342_v61 = vmul.f32 1.442695, %v1339_v59 }
 0x35f   : > { %v2699_v62 = vpop.eup %2698  ;;  %2710 = vpow2.f32 %v1340_v56 }
 0x360   : > { %v2701_v63 = vpop.eup %2700  ;;  %2712 = vpow2.f32 %v1342_v61  ;;  %2500 = vmatprep.mubr.msk.f32.mxu1 %vm657_vm3, %v2699_v62  ;;  %v756_v0 = vsel %vm657_vm3, %v2699_v62, 0.0 }
 0x361   : > { %v757_v1 = vsel %vm657_vm3, %v2701_v63, 0.0 }
 0x362   : > { %v758_v2 = vadd.f32 %v757_v1, %v756_v0 }
 0x363   : > { %v2703_v3 = vpop.eup %2702 }
 0x364   : > { %v2705_v4 = vpop.eup %2704  ;;  %v952_v5 = vsel %vm657_vm3, %v2703_v3, 0.0  ;;  %v759_v6 = vrot.slane %v758_v2, 4 }
 0x365   : > { %v953_v7 = vsel %vm657_vm3, %v2705_v4, 0.0 }
 0x366   : > { %v760_v8 = vadd.f32 %v759_v6, %v758_v2  ;;  %v954_v9 = vadd.f32 %v953_v7, %v952_v5 }
 0x367   : > { %v2707_v10 = vpop.eup %2706 }
 0x368   : > { %v2709_v11 = vpop.eup %2708  ;;  %v1148_v12 = vsel %vm657_vm3, %v2707_v10, 0.0  ;;  %v761_v13 = vrot.slane %v760_v8, 2  ;;  %v955_v14 = vrot.slane %v954_v9, 4 }
 0x369   : > { %v1149_v15 = vsel %vm657_vm3, %v2709_v11, 0.0 }
 0x36a   : > { %v762_v16 = vadd.f32 %v761_v13, %v760_v8  ;;  %v956_v18 = vadd.f32 %v955_v14, %v954_v9  ;;  %v1150_v19 = vadd.f32 %v1149_v15, %v1148_v12  ;;  %v1472_v13 = vld [vmem:[#allocation2 + $0x8] sm:$0xff] }
 0x36c   : > { %v2711_v20 = vpop.eup %2710  ;;  %v763_v21 = vrot.slane %v762_v16, 1  ;;  %v957_v22 = vrot.slane %v956_v18, 2  ;;  %v1151_v24 = vrot.slane %v1150_v19, 4 }
 0x36d   : > { %v2713_v25 = vpop.eup %2712  ;;  %v1344_v26 = vsel %vm657_vm3, %v2711_v20, 0.0 }
 0x36e   : > { %v764_v27 = vadd.f32 %v763_v21, %v762_v16  ;;  %v958_v28 = vadd.f32 %v957_v22, %v956_v18  ;;  %v1152_v29 = vadd.f32 %v1151_v24, %v1150_v19  ;;  %v1345_v38 = vsel %vm657_vm3, %v2713_v25, 0.0 }
 0x36f   : > { %v1346_v39 = vadd.f32 %v1345_v38, %v1344_v26 }
 0x370   : > { %2714 = vrcp.f32 %v764_v27  ;;  %v959_v40 = vrot.slane %v958_v28, 1  ;;  %v1153_v41 = vrot.slane %v1152_v29, 2 }
 0x371   : > { %v1347_v42 = vrot.slane %v1346_v39, 4 }
 0x372   : > { %v960_v43 = vadd.f32 %v959_v40, %v958_v28  ;;  %v1154_v44 = vadd.f32 %v1153_v41, %v1152_v29 }
 0x373   : > { %v1348_v45 = vadd.f32 %v1347_v42, %v1346_v39 }
 0x374   : > { %2716 = vrcp.f32 %v960_v43  ;;  %v1155_v46 = vrot.slane %v1154_v44, 1 }
 0x375   : > { %v1349_v47 = vrot.slane %v1348_v45, 2 }
 0x376   : > { %v1156_v48 = vadd.f32 %v1155_v46, %v1154_v44 }
 0x377   : > { %v1350_v50 = vadd.f32 %v1349_v47, %v1348_v45 }
 0x378   : > { %2718 = vrcp.f32 %v1156_v48 }
 0x379   : > { %v1351_v52 = vrot.slane %v1350_v50, 1 }
 0x37b   : > { %v1352_v53 = vadd.f32 %v1351_v52, %v1350_v50 }
 0x37d   : > { %v2715_v49 = vpop.eup %2714  ;;  %2720 = vrcp.f32 %v1352_v53 }
 0x37e   : > { %v766_v51 = vmul.f32 %v2715_v49, %v3213_v33 }
 0x380   : > { %2498 = vmatprep.subr.msk.mxu1 %vm657_vm3, %v766_v51 }
 0x381   : > { %v2717_v54 = vpop.eup %2716  ;;  %2499 = vmatpush3.xpose.msk.msra.mxu1 %vm657_vm3, %v766_v51 }
 0x382   : > { %v962_v55 = vmul.f32 %v2717_v54, %v3209_v31 }
 0x384   : > { %2501 = vmatmul.mubr.msk.f32.vlgmr.msra.gmra.mxu1 %vm657_vm3, %v2701_v63  ;;  %2508 = vmatprep.subr.msk.mxu1 %vm657_vm3, %v962_v55 }
 0x385   : > { %v2719_v57 = vpop.eup %2718  ;;  %2509 = vmatpush3.xpose.msk.msra.mxu1 %vm657_vm3, %v962_v55  ;;  %2510 = vmatprep.mubr.msk.f32.mxu1 %vm657_vm3, %v2703_v3 }
 0x386   : > { %v1158_v58 = vmul.f32 %v2719_v57, %v3221_v37 }
 0x388   : > { %2511 = vmatmul.mubr.msk.f32.vlgmr.msra.gmra.mxu1 %vm657_vm3, %v2705_v4  ;;  %2518 = vmatprep.subr.msk.mxu1 %vm657_vm3, %v1158_v58 }
 0x389   : > { %2519 = vmatpush3.xpose.msk.msra.mxu1 %vm657_vm3, %v1158_v58  ;;  %2520 = vmatprep.mubr.msk.f32.mxu1 %vm657_vm3, %v2707_v10  ;;  %v1471_v10 = vld [vmem:[#allocation2] sm:$0xff] }
 0x38a   : > { %v2721_v60 = vpop.eup %2720 }
 0x38b   : > { %v1354_v59 = vmul.f32 %v2721_v60, %v3217_v35 }
 0x38c   : > { %2521 = vmatmul.mubr.msk.f32.vlgmr.msra.gmra.mxu1 %vm657_vm3, %v2709_v11 }
 0x38d   : > { %2528 = vmatprep.subr.msk.mxu1 %vm657_vm3, %v1354_v59  ;;  %2530 = vmatprep.mubr.msk.f32.mxu1 %vm657_vm3, %v2711_v20 }
 0x38e   : > { %2529 = vmatpush3.xpose.msk.msra.mxu1 %vm657_vm3, %v1354_v59 }
 0x391   : > { %2531 = vmatmul.mubr.msk.f32.vlgmr.msra.gmra.mxu1 %vm657_vm3, %v2713_v25 }
 0x444   : > { %v2502_v56 = vpop.f32.mrf.mxu1 }
 0x446   : > { %v842_v61 = vpop.f32.mrf.mxu1 }
 0x448   : > { %v2512_v62 = vpop.f32.mrf.mxu1 }
 0x449   : > { %1443 = vrot.lane.b32.xlu0 %v2512_v62, %s2960_s26 }
 0x44a   : > { %v1038_v63 = vpop.f32.mrf.mxu1 }
 0x44c   : > { %v2522_v0 = vpop.f32.mrf.mxu1 }
 0x44d   : > { %1441 = vrot.lane.b32.xlu0 %v1038_v63, %s2960_s26  ;;  %1451 = vrot.lane.b32.xlu1 %v2522_v0, %s2961_s7 }
 0x44e   : > { %v1234_v1 = vpop.f32.mrf.mxu1 }
 0x451   : > { %v2532_v2 = vpop.f32.mrf.mxu1  ;;  %1449 = vrot.lane.b32.xlu1 %v1234_v1, %s2961_s7 }
 0x453   : > { %v1430_v3 = vpop.f32.mrf.mxu1 }
 0x454   : > { %1457 = vrot.lane.b32.xlu0 %v1430_v3, %s2962_s24 }
 0x455   : > { %1459 = vrot.lane.b32.xlu1 %v2532_v2, %s2962_s24 }
 0x4bb   : > { %v1444_v4 = vpop.permute.xlu0 %1443 }
 0x4bc   : > { %v1464_v11 = vsel %vm657_vm3, %v2502_v56, %v1444_v4 }
 0x4bf   : > { %v1452_v5 = vpop.permute.xlu1 %1451  ;;  %v1442_v6 = vpop.permute.xlu0 %1441 }
 0x4c0   : > { %v1463_v7 = vsel %vm657_vm3, %v842_v61, %v1442_v6  ;;  %v1467_v14 = vsel %vm1465_vm6, %v1464_v11, %v1452_v5 }
 0x4c3   : > { %v1450_v8 = vpop.permute.xlu1 %1449 }
 0x4c4   : > { %v1466_v9 = vsel %vm1465_vm6, %v1463_v7, %v1450_v8 }
 0x4c6   : > { %v1458_v12 = vpop.permute.xlu0 %1457 }
 0x4c7   : > { %v1469_v15 = vsel %vm1468_vm7, %v1466_v9, %v1458_v12  ;;  %v1460_v16 = vpop.permute.xlu1 %1459 }
 0x4c8   : > { %v1473_v18 = vadd.f32 %v1471_v10, %v1469_v15  ;;  %v1470_v19 = vsel %vm1468_vm7, %v1467_v14, %v1460_v16 }
 0x4c9   : > { %v1474_v20 = vadd.f32 %v1472_v13, %v1470_v19 }
 0x4ca   : > { %1475 = vst.msk [vmem:[#allocation2] sm:$0xff] %vm440_vm2, %v1473_v18 }
 0x4cb   : > { %1476 = vst.msk [vmem:[#allocation2 + $0x8] sm:$0xff] %vm440_vm2, %v1474_v20 }
 0x4cc PF: > { %p2389_p4 = scmp.lt.s32.totalorder %s3187_s29, 8 }
 0x4cd   : > { %s2965_s14 = smov (!%p2389_p4), 8   ;;  %s2966_s9 = smov (!%p2389_p4), 16  }
 0x4ce   : > { %1480 = sbr.rel (%p2389_p4) target bundleno = 1819 (0x71b), region = 64  ;;  %s2967_s11 = smov (!%p2389_p4), 24  }
 0x4d3   : > { %v1485_v21 = vld [vmem:[#allocation3 + $0x8] sm:$0xff]  ;;  %vm1486_vm8 = vcmask 64512   ;;  %v2963_v22 = vmov 0.0   ;;  %vm2964_vm9 = vmmov 0   ;;  %v1657_v24 = vld [vmem:[#allocation3 + $0x18] sm:$0xff]  ;;  %v1482_v25 = vshrl.u32 %v642_v17, 7 }
 0x4d4   : > { %2533 = vmatprep.subr.mxu0 %v2963_v22  ;;  %2535 = vmatprep.mubr.msk.f32.mxu0 %vm2964_vm9, %v2963_v22  ;;  %vm2182_vm11 = vcmask 130048   ;;  %vm2184_vm12 = vcmask 195584  }
 0x4d5   : > { %2534 = vmatpush3.msra.mxu0 %v3211_v32  ;;  %2538 = vmatprep.subr.mxu1 %v2963_v22  ;;  %v1828_v32 = vld [vmem:[#allocation3 + $0x28] sm:$0xff]  ;;  %v1483_v26 = vadd.s32 8, %v1482_v25 }
 0x4d6   : > { %2536 = vmatmul.mubr.msk.f32.vlgmr.msra.gmra.mxu0 %vm1486_vm8, %v1485_v21  ;;  %2543 = vmatprep.subr.mxu0 %v2963_v22 }
 0x4d7   : > { %2544 = vmatpush3.msra.mxu0 %v3207_v30  ;;  %2545 = vmatprep.mubr.msk.f32.mxu0 %vm2964_vm9, %v2963_v22  ;;  %v1999_v30 = vld [vmem:[#allocation3 + $0x38] sm:$0xff]  ;;  %vm1484_vm10 = vcmp.ge.s32.totalorder %v1483_v26, %v3197_v23 }
 0x4d8   : > { %2553 = vmatprep.subr.mxu0 %v2963_v22  ;;  %2540 = vmatprep.mubr.msk.f32.mxu1 %vm2964_vm9, %v2963_v22 }
 0x4da   : > { %2546 = vmatmul.mubr.msk.f32.vlgmr.msra.gmra.mxu0 %vm1486_vm8, %v1657_v24 }
 0x4db   : > { %2554 = vmatpush3.msra.mxu0 %v3219_v36  ;;  %2555 = vmatprep.mubr.msk.f32.mxu0 %vm2964_vm9, %v2963_v22 }
 0x4dc   : > { %2563 = vmatprep.subr.mxu0 %v2963_v22 }
 0x4de   : > { %2556 = vmatmul.mubr.msk.f32.vlgmr.msra.gmra.mxu0 %vm1486_vm8, %v1828_v32 }
 0x4df   : > { %2564 = vmatpush3.msra.mxu0 %v3215_v34  ;;  %2565 = vmatprep.mubr.msk.f32.mxu0 %vm2964_vm9, %v2963_v22 }
 0x4e2   : > { %2566 = vmatmul.mubr.msk.f32.vlgmr.msra.gmra.mxu0 %vm1486_vm8, %v1999_v30 }
 0x596   : > { %v1556_v36 = vpop.f32.mrf.mxu0 }
 0x597   : > { %v1560_v27 = vsel %vm1484_vm10, %v1556_v36, -inf }
 0x598   : > { %v1561_v28 = vsel %vm1486_vm8, %v1560_v27, -inf  ;;  %v2537_v29 = vpop.f32.mrf.mxu0 }
 0x599   : > { %v1562_v38 = vrot.slane %v1561_v28, 4 }
 0x59a   : > { %v1727_v34 = vpop.f32.mrf.mxu0 }
 0x59b   : > { %v1563_v39 = vmax.f32 %v1561_v28, %v1562_v38  ;;  %v1731_v40 = vsel %vm1484_vm10, %v1727_v34, -inf }
 0x59c   : > { %v1732_v41 = vsel %vm1486_vm8, %v1731_v40, -inf  ;;  %v2547_v42 = vpop.f32.mrf.mxu0 }
 0x59d   : > { %v1564_v17 = vrot.slane %v1563_v39, 2  ;;  %v1733_v43 = vrot.slane %v1732_v41, 4 }
 0x59e   : > { %v1898_v44 = vpop.f32.mrf.mxu0 }
 0x59f   : > { %v1565_v45 = vmax.f32 %v1563_v39, %v1564_v17  ;;  %v1734_v46 = vmax.f32 %v1732_v41, %v1733_v43  ;;  %v1902_v47 = vsel %vm1484_vm10, %v1898_v44, -inf }
 0x5a0   : > { %v1903_v48 = vsel %vm1486_vm8, %v1902_v47, -inf  ;;  %v2557_v50 = vpop.f32.mrf.mxu0 }
 0x5a1   : > { %v1566_v52 = vrot.slane %v1565_v45, 1  ;;  %v1735_v53 = vrot.slane %v1734_v46, 2  ;;  %v1904_v49 = vrot.slane %v1903_v48, 4 }
 0x5a2   : > { %v2069_v51 = vpop.f32.mrf.mxu0 }
 0x5a3   : > { %v1567_v54 = vmax.f32 %v1565_v45, %v1566_v52  ;;  %v1736_v55 = vmax.f32 %v1734_v46, %v1735_v53  ;;  %v1905_v57 = vmax.f32 %v1903_v48, %v1904_v49  ;;  %v2073_v58 = vsel %vm1484_vm10, %v2069_v51, -inf }
 0x5a4   : > { %v2074_v60 = vsel %vm1486_vm8, %v2073_v58, -inf  ;;  %v2567_v59 = vpop.f32.mrf.mxu0 }
 0x5a5   : > { %v1568_v56 = vsub.f32 %v1560_v27, %v1567_v54  ;;  %v1737_v61 = vrot.slane %v1736_v55, 1  ;;  %v1906_v62 = vrot.slane %v1905_v57, 2  ;;  %v2075_v63 = vrot.slane %v2074_v60, 4 }
 0x5a7   : > { %v1569_v0 = vmul.f32 1.442695, %v1568_v56  ;;  %v1738_v1 = vmax.f32 %v1736_v55, %v1737_v61  ;;  %v1907_v2 = vmax.f32 %v1905_v57, %v1906_v62  ;;  %v2076_v3 = vmax.f32 %v2074_v60, %v2075_v63 }
 0x5a9   : > { %2722 = vpow2.f32 %v1569_v0  ;;  %v1739_v4 = vsub.f32 %v1731_v40, %v1738_v1  ;;  %v1908_v5 = vrot.slane %v1907_v2, 1  ;;  %v2077_v6 = vrot.slane %v2076_v3, 2 }
 0x5ab   : > { %v1740_v7 = vmul.f32 1.442695, %v1739_v4  ;;  %v1909_v8 = vmax.f32 %v1907_v2, %v1908_v5  ;;  %v2078_v9 = vmax.f32 %v2076_v3, %v2077_v6  ;;  %v2186_v3 = vld [vmem:[#allocation2 + $0x8] sm:$0xff] }
 0x5ad   : > { %2724 = vpow2.f32 %v1740_v7  ;;  %v1910_v23 = vsub.f32 %v1902_v47, %v1909_v8  ;;  %v2079_v10 = vrot.slane %v2078_v9, 1 }
 0x5af   : > { %v1911_v11 = vmul.f32 1.442695, %v1910_v23  ;;  %v2080_v12 = vmax.f32 %v2078_v9, %v2079_v10 }
 0x5b1   : > { %2726 = vpow2.f32 %v1911_v11  ;;  %v2081_v13 = vsub.f32 %v2073_v58, %v2080_v12 }
 0x5b3   : > { %v2082_v14 = vmul.f32 1.442695, %v2081_v13 }
 0x5b5   : > { %2728 = vpow2.f32 %v2082_v14 }
 0x5b6   : > { %v2723_v15 = vpop.eup %2722 }
 0x5b7   : > { %v1571_v16 = vsel %vm1486_vm8, %v2723_v15, 0.0 }
 0x5b8   : > { %v1572_v18 = vrot.slane %v1571_v16, 4 }
 0x5ba   : > { %v2725_v19 = vpop.eup %2724  ;;  %v1573_v20 = vadd.f32 %v1572_v18, %v1571_v16 }
 0x5bb   : > { %v1742_v21 = vsel %vm1486_vm8, %v2725_v19, 0.0 }
 0x5bc   : > { %v1743_v24 = vrot.slane %v1742_v21, 4  ;;  %v1574_v32 = vrot.slane %v1573_v20, 2 }
 0x5be   : > { %v2727_v30 = vpop.eup %2726  ;;  %v1744_v25 = vadd.f32 %v1743_v24, %v1742_v21  ;;  %v1575_v26 = vadd.f32 %v1574_v32, %v1573_v20 }
 0x5bf   : > { %v1913_v36 = vsel %vm1486_vm8, %v2727_v30, 0.0 }
 0x5c0   : > { %v1745_v27 = vrot.slane %v1744_v25, 2  ;;  %v1914_v28 = vrot.slane %v1913_v36, 4  ;;  %v1576_v29 = vrot.slane %v1575_v26, 1 }
 0x5c2   : > { %v2729_v38 = vpop.eup %2728  ;;  %v1915_v34 = vadd.f32 %v1914_v28, %v1913_v36  ;;  %v1577_v39 = vadd.f32 %v1576_v29, %v1575_v26  ;;  %v1746_v40 = vadd.f32 %v1745_v27, %v1744_v25 }
 0x5c3   : > { %v2084_v41 = vsel %vm1486_vm8, %v2729_v38, 0.0 }
 0x5c4   : > { %v1916_v42 = vrot.slane %v1915_v34, 2  ;;  %v2085_v17 = vrot.slane %v2084_v41, 4  ;;  %2730 = vrcp.f32 %v1577_v39  ;;  %v1747_v43 = vrot.slane %v1746_v40, 1 }
 0x5c6   : > { %v2086_v44 = vadd.f32 %v2085_v17, %v2084_v41  ;;  %v1748_v45 = vadd.f32 %v1747_v43, %v1746_v40  ;;  %v1917_v46 = vadd.f32 %v1916_v42, %v1915_v34 }
 0x5c8   : > { %v2087_v47 = vrot.slane %v2086_v44, 2  ;;  %2732 = vrcp.f32 %v1748_v45  ;;  %v1918_v48 = vrot.slane %v1917_v46, 1 }
 0x5ca   : > { %v1919_v50 = vadd.f32 %v1918_v48, %v1917_v46  ;;  %v2088_v52 = vadd.f32 %v2087_v47, %v2086_v44 }
 0x5cc   : > { %2734 = vrcp.f32 %v1919_v50  ;;  %v2089_v53 = vrot.slane %v2088_v52, 1 }
 0x5ce   : > { %v2090_v49 = vadd.f32 %v2089_v53, %v2088_v52 }
 0x5d0   : > { %2736 = vrcp.f32 %v2090_v49 }
 0x5d1   : > { %v2731_v51 = vpop.eup %2730 }
 0x5d2   : > { %v1579_v54 = vmul.f32 %v2731_v51, %v3213_v33 }
 0x5d4   : > { %2539 = vmatpush3.xpose.msk.msra.mxu1 %vm1486_vm8, %v1579_v54 }
 0x5d5   : > { %v2733_v55 = vpop.eup %2732  ;;  %2548 = vmatprep.subr.mxu1 %v2963_v22 }
 0x5d6   : > { %v1750_v57 = vmul.f32 %v2733_v55, %v3209_v31 }
 0x5d7   : > { %2541 = vmatmul.mubr.msk.f32.vlgmr.msra.gmra.mxu1 %vm1486_vm8, %v2723_v15 }
 0x5d8   : > { %2549 = vmatpush3.xpose.msk.msra.mxu1 %vm1486_vm8, %v1750_v57  ;;  %2550 = vmatprep.mubr.msk.f32.mxu1 %vm2964_vm9, %v2963_v22 }
 0x5d9   : > { %v2735_v58 = vpop.eup %2734  ;;  %2558 = vmatprep.subr.mxu1 %v2963_v22 }
 0x5da   : > { %v1921_v60 = vmul.f32 %v2735_v58, %v3221_v37 }
 0x5db   : > { %2551 = vmatmul.mubr.msk.f32.vlgmr.msra.gmra.mxu1 %vm1486_vm8, %v2725_v19 }
 0x5dc   : > { %2559 = vmatpush3.xpose.msk.msra.mxu1 %vm1486_vm8, %v1921_v60  ;;  %2560 = vmatprep.mubr.msk.f32.mxu1 %vm2964_vm9, %v2963_v22 }
 0x5dd   : > { %v2737_v31 = vpop.eup %2736  ;;  %2568 = vmatprep.subr.mxu1 %v2963_v22 }
 0x5de   : > { %v2092_v33 = vmul.f32 %v2737_v31, %v3217_v35 }
 0x5df   : > { %2561 = vmatmul.mubr.msk.f32.vlgmr.msra.gmra.mxu1 %vm1486_vm8, %v2727_v30 }
 0x5e0   : > { %2569 = vmatpush3.xpose.msk.msra.mxu1 %vm1486_vm8, %v2092_v33  ;;  %2570 = vmatprep.mubr.msk.f32.mxu1 %vm2964_vm9, %v2963_v22 }
 0x5e3   : > { %2571 = vmatmul.mubr.msk.f32.vlgmr.msra.gmra.mxu1 %vm1486_vm8, %v2729_v38 }
 0x697   : > { %v1652_v37 = vpop.f32.mrf.mxu1 }
 0x699   : > { %v2542_v59 = vpop.f32.mrf.mxu1 }
 0x69b   : > { %v1823_v56 = vpop.f32.mrf.mxu1 }
 0x69c   : > { %2170 = vrot.lane.b32.xlu0 %v1823_v56, %s2965_s14 }
 0x69d   : > { %v2552_v61 = vpop.f32.mrf.mxu1 }
 0x69f   : > { %v1994_v62 = vpop.f32.mrf.mxu1 }
 0x6a0   : > { %2174 = vrot.lane.b32.xlu0 %v1994_v62, %s2966_s9 }
 0x6a1   : > { %v2562_v63 = vpop.f32.mrf.mxu1 }
 0x6a3   : > { %v2165_v35 = vpop.f32.mrf.mxu1 }
 0x6a4   : > { %2178 = vrot.lane.b32.xlu1 %v2165_v35, %s2967_s11 }
 0x6a5   : > { %v2572_v0 = vpop.f32.mrf.mxu1 }
 0x70e   : > { %v2171_v1 = vpop.permute.xlu0 %2170 }
 0x70f   : > { %v2181_v22 = vsel %vm1486_vm8, %v1652_v37, %v2171_v1 }
 0x712   : > { %v2175_v2 = vpop.permute.xlu0 %2174 }
 0x713   : > { %v2183_v4 = vsel %vm2182_vm11, %v2181_v22, %v2175_v2 }
 0x716   : > { %v2179_v5 = vpop.permute.xlu1 %2178 }
 0x717   : > { %v2185_v6 = vsel %vm2184_vm12, %v2183_v4, %v2179_v5 }
 0x718   : > { %v2187_v7 = vadd.f32 %v2186_v3, %v2185_v6 }
 0x71a   : > { %2188 = vst.msk [vmem:[#allocation2 + $0x8] sm:$0xff] %vm440_vm2, %v2187_v7 }
 0x71b PF: > { %p2402_p12 = scmp.ne.s32.totalorder %s2932_s18, 1 }
 0x71d   : > { %2192 = sbr.rel (%p2402_p12) target bundleno = 1828 (0x724), region = 68 }
 0x722   : > { %v2193_v8 = vld [vmem:[#allocation2] sm:$0xff]  ;;  %v2194_v9 = vld [vmem:[#allocation2 + $0x8] sm:$0xff] }
 0x723   : > { %2195 = vst.msk [vmem:[%s3169_s1] sm:$0xff] %vm440_vm2, %v2193_v8  ;;  %2196 = vst.msk [vmem:[%s3169_s1 + $0x8] sm:$0xff] %vm440_vm2, %v2194_v9 }
 0x724 PF: > { %s2409_s30 = sshll.u32 %s2936_s19, 8  ;;  %s2212_s18 = sshll.u32 %s3169_s1, 4  ;;  %s3376_s18 = int_to_ptr.vmem [resolvable:$true] %s2212_s18 }
 0x725   : > { %s3373_s25 = scalar_lea.hbm %s3433_s4, %s2409_s30  ;;  %s2198_s27 = scalar_lea.sflag [#allocation6], %s3151_s10 }
 0x726   : > { %s2844_s29 = scalar_lea.vmem %s3376_s18, 256  ;;  %p3451_p0 = scmp.ne.s32.totalorder %s3447_s23, 0 }
 0x727   : > { %p2845_p10 = scmp.ne.s32.totalorder %s3376_s18, %s2844_s29  ;;  %s2968_s12 = smov [#allocation12]  }
 0x728   : > { %s2848_s26 = sshll.u32 %s2968_s12, 4  ;;  %s2849_s26 = int_to_ptr.vmem [resolvable:$false] %s2848_s26 }
 0x729   : > { %p2846_p2 = pnand %p2845_p10, %p3451_p0  ;;  %s2850_s19 = scalar_lea.vmem %s2849_s26, 512 }
 0x72a   : > { %p2851_p7 = scmp.lt.s32.totalorder %s3376_s18, %s2849_s26  ;;  %p2852_p6 = scmp.lt.s32.totalorder %s2850_s19, %s2844_s29 }
 0x72b   : > { %p2847_p5 = pneg %p2846_p2 }
 0x72c   : > { %p2853_p11 = por %p2852_p6, %p2851_p7 }
 0x72e   : > { %p2854_p9 = pnand %p2853_p11, %p2847_p5 }
 0x730   : > { %2857 = shalt.err (!%p2854_p9)
}
 0x731   : > { %s2858_s1 = scalar_lea.hbm %s3373_s25, 256  ;;  %s2862_s14 = scalar_lea.hbm %s3433_s4, 512 }
 0x732   : > { %p2859_p13 = scmp.ne.s32.totalorder %s3373_s25, %s2858_s1  ;;  %p2863_p1 = scmp.lt.s32.totalorder %s3373_s25, %s3433_s4 }
 0x733   : > { %p2864_p4 = scmp.lt.s32.totalorder %s2862_s14, %s2858_s1 }
 0x734   : > { %p2860_p3 = pnand %p2859_p13, %p3451_p0 }
 0x735   : > { %p2865_p12 = por %p2864_p4, %p2863_p1 }
 0x736   : > { %p2861_p8 = pneg %p2860_p3 }
 0x738   : > { %p2866_p10 = pnand %p2865_p12, %p2861_p8 }
 0x73a   : > { %2869 = shalt.err (!%p2866_p10)
}
 0x73b   : > { %s2969_s30 = smov 128   ;;  %s2970_s5 = smov 8  }
 0x73c   : > { %2587 = dma.vmem_to_hbm [thread:$0]  (%p3451_p0), %s3376_s18, 256, %s3373_s25, %s2198_s27, %s2969_s30, %s2969_s30, %s2970_s5  }
 0x73d PF: > { %p2614_p2 = scmp.ge.s32.totalorder %s2948_s22, 2  ;;  %s2227_s2 = sand.u32 1, %s2920_s15  }
 0x73e   : > { %p3452_p5 = scmp.ne.s32.totalorder %s3442_s28, 0  ;;  %s2228_s29 = scalar_lea.sflag [#allocation6], %s2227_s2 }
 0x740   : > { %p2604_p7 = pnand %p2614_p2, %p3452_p5 }
 0x742   : > { %p2605_p6 = pneg %p2604_p7 }
 0x744   : > { %2915 = dma.done.wait (%p2605_p6), %s2228_s29, 256  }
 0x745   : > { %2917 = vsyncadd (%p2605_p6), %s2228_s29, 4294967040  ;;  %s22_s22 = sadd.s32 1, %s2948_s22   ;;  %s3453_s15 = smov %s2924_s16 }
 0x746   : > { %p19_p11 = scmp.ge.s32.totalorder %s22_s22, 6   ;;  %s3454_s16 = smov %s2928_s17 }
 0x747   : > { %s3455_s17 = smov %s3133_s13  ;;  %s3456_s18 = smov %s2940_s20 }
 0x748   : > { %s3457_s19 = smov %s2944_s21  ;;  %s3458_s20 = smov %s3461_s8 }
 0x749   : > { %s3459_s21 = smov %s3465_s6  ;;  %21 = sbr.rel (!%p19_p11) target bundleno = 12 (0xc), region = 122 }
 0x74e   :  { %2233 = vsyncpa [#allocation5], 1 }
 0x74f   :  { %2235 = vsyncpa [#allocation5 + $0x1], 1 }
 0x750   :  { %2236 = vsyncpa [#allocation8], 1 }
 0x751   :  { %2237 = vsyncpa [#allocation11], 1 }
 0x752   :  { %2238 = vsyncpa [#allocation6], 1 }
 0x753   :  { %2240 = vsyncpa [#allocation6 + $0x1], 1 }

</bundles_post_ra>
